<compile_context>
chip_gen: v7x
topology: tpu7x:2x2x1
jax: 0.10.0
libtpu: 0.0.40
codegen_flags: <defaults>
</compile_context>

<pallas_src>
import math

import jax
import jax.numpy as jnp
from jax.experimental import pallas as pl
from jax.experimental.pallas import tpu as pltpu

_MXU_DTYPE = jnp.bfloat16


# ----------------------------------------------------------------------------
# Helpers
# ----------------------------------------------------------------------------
def _round_up(x, m):
    return ((x + m - 1) // m) * m


def _pad2d(a, rows, cols):
    r, c = a.shape
    return jnp.pad(a, ((0, rows - r), (0, cols - c)))


def _choose_tile(m, cap=1024):
    """Row-tile: as large as possible (amortize ~0.35us/grid-step) while giving
    >= 2 grid steps whenever the problem allows (v7x shards 'parallel' axes
    over its 2 TensorCores)."""
    tm = max(8, min(cap, _round_up(-(-m // 2), 8)))
    mp = _round_up(m, tm)
    return tm, mp


# ----------------------------------------------------------------------------
# Pallas kernels
# ----------------------------------------------------------------------------
def _conv_relu_pool_kernel(p00_ref, p01_ref, p10_ref, p11_ref, w_ref, b_ref,
                           o_ref):
    # p**_ref: (TM, Kp) bf16 patches of the four 2x2-pool phases
    # w_ref: (Kp, Cout) bf16, b_ref: (1, Cout) f32, o_ref: (TM, Cout) f32
    # max_pool(relu(conv + b)) == relu(max(conv phases) + b)  (monotone ops).
    w = w_ref[...]
    m = jnp.dot(p00_ref[...], w, preferred_element_type=jnp.float32)
    m = jnp.maximum(m, jnp.dot(p01_ref[...], w, preferred_element_type=jnp.float32))
    m = jnp.maximum(m, jnp.dot(p10_ref[...], w, preferred_element_type=jnp.float32))
    m = jnp.maximum(m, jnp.dot(p11_ref[...], w, preferred_element_type=jnp.float32))
    o_ref[...] = jnp.maximum(m + b_ref[...], 0.0).astype(o_ref.dtype)


def _mlp_head_kernel(x_ref, w1_ref, b1_ref, w2_ref, b2_ref, w3_ref, b3_ref,
                     o_ref):
    # Fused l1 -> relu -> l2 -> relu -> l3; weights resident in VMEM,
    # intermediates never leave vregs; bf16 MXU operands, f32 accumulation.
    h = jnp.maximum(
        jnp.dot(x_ref[...], w1_ref[...], preferred_element_type=jnp.float32)
        + b1_ref[...], 0.0)
    h = jnp.maximum(
        jnp.dot(h.astype(w2_ref.dtype), w2_ref[...],
                preferred_element_type=jnp.float32) + b2_ref[...], 0.0)
    o_ref[...] = (
        jnp.dot(h.astype(w3_ref.dtype), w3_ref[...],
                preferred_element_type=jnp.float32) + b3_ref[...]
    ).astype(o_ref.dtype)


# ----------------------------------------------------------------------------
# Pallas wrappers
# ----------------------------------------------------------------------------
def _conv_relu_pool_pallas(x_nhwc, w, b, *, tm_cap=1024):
    """2x2/2 max_pool(relu(conv2d_valid(x, w) + b)); NHWC in, NHWC out.

    im2col (wrapper-side, bf16) split into the four pool phases; one Pallas
    kernel fuses the 4 matmuls, bias, ReLU and the max-pool, and writes the
    pooled output with the true channel count as the last dim.
    """
    B, H, W, Cin = x_nhwc.shape
    Cout, _, kh, kw = w.shape
    OH, OW = H - kh + 1, W - kw + 1
    PH, PW = OH // 2, OW // 2
    K = Cin * kh * kw
    Kp = _round_up(K, 128)
    M = B * PH * PW
    tm, Mp = _choose_tile(M, tm_cap)

    # Patches with K ordered (kh, kw, cin); bf16 halves the materialized bytes.
    cols = [x_nhwc[:, i:i + OH, j:j + OW, :]
            for i in range(kh) for j in range(kw)]
    patches = jnp.stack(cols, axis=3).reshape(B, OH, OW, K).astype(_MXU_DTYPE)
    phases = [
        _pad2d(patches[:, di::2, dj::2, :].reshape(M, K), Mp, Kp)
        for di in (0, 1) for dj in (0, 1)
    ]

    # Weight (Cout, Cin, kh, kw) -> (Kp, Cout), K ordered (kh, kw, cin) to match.
    wp = _pad2d(
        w.transpose(0, 2, 3, 1).reshape(Cout, K).astype(_MXU_DTYPE).T, Kp, Cout)
    bp = b.astype(jnp.float32).reshape(1, Cout)

    x_spec = pl.BlockSpec((tm, Kp), lambda i: (i, 0))      # streamed patch tiles
    out = pl.pallas_call(
        _conv_relu_pool_kernel,
        out_shape=jax.ShapeDtypeStruct((Mp, Cout), jnp.float32),
        grid_spec=pltpu.PrefetchScalarGridSpec(
            num_scalar_prefetch=0,
            grid=(Mp // tm,),
            in_specs=[x_spec, x_spec, x_spec, x_spec,
                      pl.BlockSpec((Kp, Cout), lambda i: (0, 0)),   # resident W
                      pl.BlockSpec((1, Cout), lambda i: (0, 0))],   # resident b
            out_specs=pl.BlockSpec((tm, Cout), lambda i: (i, 0)),
        ),
        compiler_params=pltpu.CompilerParams(
            dimension_semantics=("parallel",)),
        cost_estimate=pl.CostEstimate(
            flops=2 * 4 * Mp * Kp * Cout,
            transcendentals=0,
            bytes_accessed=(4 * Mp * Kp + Kp * Cout) * 2 + (Mp + 1) * Cout * 4),
    )(*phases, wp, bp)
    return out[:M].reshape(B, PH, PW, Cout)


def _mlp_head_pallas(x_nhwc, fc_params, *, tb_cap=1024):
    """Fused l1/l2/l3 head on the pooled conv2 activation (NHWC)."""
    (w1, b1), (w2, b2), (w3, b3) = fc_params
    B, PH, PW, C = x_nhwc.shape
    K = PH * PW * C
    H1, H2, N = w1.shape[0], w2.shape[0], w3.shape[0]
    Kp = _round_up(K, 256)                      # 400 -> 512: aligned MXU loads
    H1p, H2p = _round_up(H1, 128), _round_up(H2, 128)
    tb, Bp = _choose_tile(B, tb_cap)

    xp = _pad2d(x_nhwc.reshape(B, K).astype(_MXU_DTYPE), Bp, Kp)
    # torch flattens NCHW (c, h, w); we flatten NHWC (h, w, c) -> permute the
    # l1 weight columns once instead of transposing the activation.
    w1perm = w1.reshape(H1, C, PH, PW).transpose(0, 2, 3, 1).reshape(H1, K)
    w1p = _pad2d(w1perm.astype(_MXU_DTYPE).T, Kp, H1p)
    b1p = _pad2d(b1.astype(jnp.float32).reshape(1, H1), 1, H1p)
    w2p = _pad2d(w2.astype(_MXU_DTYPE).T, H1p, H2p)
    b2p = _pad2d(b2.astype(jnp.float32).reshape(1, H2), 1, H2p)
    w3p = _pad2d(w3.astype(_MXU_DTYPE).T, H2p, N)
    b3p = b3.astype(jnp.float32).reshape(1, N)

    out = pl.pallas_call(
        _mlp_head_kernel,
        out_shape=jax.ShapeDtypeStruct((Bp, N), jnp.float32),
        grid_spec=pltpu.PrefetchScalarGridSpec(
            num_scalar_prefetch=0,
            grid=(Bp // tb,),
            in_specs=[
                pl.BlockSpec((tb, Kp), lambda i: (i, 0)),     # streamed batch
                pl.BlockSpec((Kp, H1p), lambda i: (0, 0)),    # resident weights
                pl.BlockSpec((1, H1p), lambda i: (0, 0)),
                pl.BlockSpec((H1p, H2p), lambda i: (0, 0)),
                pl.BlockSpec((1, H2p), lambda i: (0, 0)),
                pl.BlockSpec((H2p, N), lambda i: (0, 0)),
                pl.BlockSpec((1, N), lambda i: (0, 0)),
            ],
            out_specs=pl.BlockSpec((tb, N), lambda i: (i, 0)),
        ),
        compiler_params=pltpu.CompilerParams(
            dimension_semantics=("parallel",)),
        cost_estimate=pl.CostEstimate(
            flops=2 * Bp * (Kp * H1p + H1p * H2p + H2p * N),
            transcendentals=0,
            bytes_accessed=(Bp * Kp + Kp * H1p + H1p * H2p + H2p * N) * 2
                           + (Bp * N + H1p + H2p + N) * 4),
    )(xp, w1p, b1p, w2p, b2p, w3p, b3p)
    return out[:B]


# ----------------------------------------------------------------------------
# CNNNet forward
# ----------------------------------------------------------------------------
def cnn_net_forward(x, params):
    x = x.reshape(-1, 3, 32, 32).astype(jnp.float32)
    x = x.transpose(0, 2, 3, 1)                      # NCHW -> NHWC once; XLA
    x = _conv_relu_pool_pallas(x, *params["c1"])     # fuses it into the patch
    x = _conv_relu_pool_pallas(x, *params["c2"])     # build.  (B,5,5,16)
    return _mlp_head_pallas(x, (params["l1"], params["l2"], params["l3"]))


# ----------------------------------------------------------------------------
# Parameter init (PyTorch-default-like uniform bounds) and pure-JAX reference
# ----------------------------------------------------------------------------
def init_params(key):
    def conv_init(k, cout, cin, kh, kw):
        k1, k2 = jax.random.split(k)
        bound = 1.0 / math.sqrt(cin * kh * kw)
        w = jax.random.uniform(k1, (cout, cin, kh, kw), jnp.float32, -bound, bound)
        b = jax.random.uniform(k2, (cout,), jnp.float32, -bound, bound)
        return w, b

    def lin_init(k, cout, cin):
        k1, k2 = jax.random.split(k)
        bound = 1.0 / math.sqrt(cin)
        w = jax.random.uniform(k1, (cout, cin), jnp.float32, -bound, bound)
        b = jax.random.uniform(k2, (cout,), jnp.float32, -bound, bound)
        return w, b

    ks = jax.random.split(key, 5)
    return {
        "c1": conv_init(ks[0], 6, 3, 5, 5),
        "c2": conv_init(ks[1], 16, 6, 5, 5),
        "l1": lin_init(ks[2], 120, 400),
        "l2": lin_init(ks[3], 84, 120),
        "l3": lin_init(ks[4], 10, 84),
    }


def _maxpool2x2_nchw(x):
    B, C, H, W = x.shape
    return x.reshape(B, C, H // 2, 2, W // 2, 2).max(axis=(3, 5))


def cnn_net_reference(x, params, mxu_dtype=jnp.float32):
    """Pure-JAX reference.  mxu_dtype=bfloat16 mirrors the kernels' operand
    rounding (with f32 accumulation) for a tight comparison."""
    def conv(x, w, b):
        y = jax.lax.conv_general_dilated(
            x.astype(mxu_dtype), w.astype(mxu_dtype), (1, 1), "VALID",
            dimension_numbers=("NCHW", "OIHW", "NCHW"),
            preferred_element_type=jnp.float32)
        return y + b.reshape(1, -1, 1, 1)

    def linear(x, w, b):
        return jnp.dot(x.astype(mxu_dtype), w.astype(mxu_dtype).T,
                       preferred_element_type=jnp.float32) + b

    x = x.reshape(-1, 3, 32, 32).astype(jnp.float32)
    x = _maxpool2x2_nchw(jnp.maximum(conv(x, *params["c1"]), 0.0))
    x = _maxpool2x2_nchw(jnp.maximum(conv(x, *params["c2"]), 0.0))
    x = x.reshape(x.shape[0], 400)
    x = jnp.maximum(linear(x, *params["l1"]), 0.0)
    x = jnp.maximum(linear(x, *params["l2"]), 0.0)
    return linear(x, *params["l3"])


if __name__ == "__main__":
    key = jax.random.PRNGKey(0)
    k_x, k_p = jax.random.split(key)

    # CIFAR-like batch: (B=2, C=3, H=32, W=32)
    x = jax.random.normal(k_x, (2, 3, 32, 32), jnp.float32)
    params = init_params(k_p)

    fwd = jax.jit(cnn_net_forward)
    out = jax.block_until_ready(fwd(x, params))
    assert out.shape == (2, 10)

    # Tight check vs. a reference applying the same bf16 operand rounding.
    ref_bf16 = cnn_net_reference(x, params, mxu_dtype=_MXU_DTYPE)
    err_bf16 = float(jnp.max(jnp.abs(out - ref_bf16)))
    assert jnp.allclose(out, ref_bf16, atol=2e-3, rtol=2e-3), err_bf16

    # Sanity check vs. the exact f32 module semantics (bf16 MXU operands add
    # ~1e-3-level noise).
    ref_f32 = cnn_net_reference(x, params, mxu_dtype=jnp.float32)
    err_f32 = float(jnp.max(jnp.abs(out - ref_f32)))
    assert jnp.allclose(out, ref_f32, atol=3e-2, rtol=3e-2), err_f32

    print("KERNEL_OK")
</pallas_src>

<mosaic_0001>
module attributes {stable_mosaic.version = 11 : i64} {
  func.func @_conv_relu_pool_kernel(%arg0: i32, %arg1: memref<200x128xbf16, #tpu.memory_space<vmem>>, %arg2: memref<200x128xbf16, #tpu.memory_space<vmem>>, %arg3: memref<200x128xbf16, #tpu.memory_space<vmem>>, %arg4: memref<200x128xbf16, #tpu.memory_space<vmem>>, %arg5: memref<128x6xbf16, #tpu.memory_space<vmem>>, %arg6: memref<1x6xf32, #tpu.memory_space<vmem>>, %arg7: memref<200x6xf32, #tpu.memory_space<vmem>>) attributes {dimension_semantics = [#tpu.dimension_semantics<parallel>], iteration_bounds = array<i64: 2>, scalar_prefetch = 0 : i64, scratch_operands = 0 : i64, tpu.core_type = #tpu.core_type<tc>, window_params = [{transform_indices = @transform_0, window_bounds = array<i64: 200, 128>}, {transform_indices = @transform_1, window_bounds = array<i64: 200, 128>}, {transform_indices = @transform_2, window_bounds = array<i64: 200, 128>}, {transform_indices = @transform_3, window_bounds = array<i64: 200, 128>}, {pipeline_mode = #tpu.pipeline_mode<synchronous>, transform_indices = @transform_4, window_bounds = array<i64: 128, 6>}, {pipeline_mode = #tpu.pipeline_mode<synchronous>, transform_indices = @transform_5, window_bounds = array<i64: 1, 6>}, {transform_indices = @transform_6, window_bounds = array<i64: 200, 6>}]} {
    %c0 = arith.constant 0 : index
    %c0_0 = arith.constant 0 : index
    %0 = vector.load %arg5[%c0, %c0_0] : memref<128x6xbf16, #tpu.memory_space<vmem>>, vector<128x6xbf16>
    %c0_1 = arith.constant 0 : index
    %c0_2 = arith.constant 0 : index
    %1 = vector.load %arg1[%c0_1, %c0_2] : memref<200x128xbf16, #tpu.memory_space<vmem>>, vector<200x128xbf16>
    %cst = arith.constant dense<0.000000e+00> : vector<200x6xf32>
    %2 = tpu.matmul %1, %0, %cst {dimension_numbers = #tpu.dot_dimension_numbers<[1], [0], [0], [1], [0, 0, 1, 1], [], []>} : vector<200x128xbf16>, vector<128x6xbf16>, vector<200x6xf32> -> vector<200x6xf32>
    %c0_3 = arith.constant 0 : index
    %c0_4 = arith.constant 0 : index
    %3 = vector.load %arg2[%c0_3, %c0_4] : memref<200x128xbf16, #tpu.memory_space<vmem>>, vector<200x128xbf16>
    %cst_5 = arith.constant dense<0.000000e+00> : vector<200x6xf32>
    %4 = tpu.matmul %3, %0, %cst_5 {dimension_numbers = #tpu.dot_dimension_numbers<[1], [0], [0], [1], [0, 0, 1, 1], [], []>} : vector<200x128xbf16>, vector<128x6xbf16>, vector<200x6xf32> -> vector<200x6xf32>
    %5 = arith.maximumf %2, %4 : vector<200x6xf32>
    %c0_6 = arith.constant 0 : index
    %c0_7 = arith.constant 0 : index
    %6 = vector.load %arg3[%c0_6, %c0_7] : memref<200x128xbf16, #tpu.memory_space<vmem>>, vector<200x128xbf16>
    %cst_8 = arith.constant dense<0.000000e+00> : vector<200x6xf32>
    %7 = tpu.matmul %6, %0, %cst_8 {dimension_numbers = #tpu.dot_dimension_numbers<[1], [0], [0], [1], [0, 0, 1, 1], [], []>} : vector<200x128xbf16>, vector<128x6xbf16>, vector<200x6xf32> -> vector<200x6xf32>
    %8 = arith.maximumf %5, %7 : vector<200x6xf32>
    %c0_9 = arith.constant 0 : index
    %c0_10 = arith.constant 0 : index
    %9 = vector.load %arg4[%c0_9, %c0_10] : memref<200x128xbf16, #tpu.memory_space<vmem>>, vector<200x128xbf16>
    %cst_11 = arith.constant dense<0.000000e+00> : vector<200x6xf32>
    %10 = tpu.matmul %9, %0, %cst_11 {dimension_numbers = #tpu.dot_dimension_numbers<[1], [0], [0], [1], [0, 0, 1, 1], [], []>} : vector<200x128xbf16>, vector<128x6xbf16>, vector<200x6xf32> -> vector<200x6xf32>
    %11 = arith.maximumf %8, %10 : vector<200x6xf32>
    %c0_12 = arith.constant 0 : index
    %c0_13 = arith.constant 0 : index
    %12 = vector.load %arg6[%c0_12, %c0_13] : memref<1x6xf32, #tpu.memory_space<vmem>>, vector<1x6xf32>
    %13 = vector.broadcast %12 : vector<1x6xf32> to vector<200x6xf32>
    %14 = arith.addf %11, %13 : vector<200x6xf32>
    %cst_14 = arith.constant 0.000000e+00 : f32
    %15 = vector.broadcast %cst_14 : f32 to vector<200x6xf32>
    %16 = arith.maximumf %14, %15 : vector<200x6xf32>
    %c0_15 = arith.constant 0 : index
    %c0_16 = arith.constant 0 : index
    %17 = vector.load %arg7[%c0_15, %c0_16] : memref<200x6xf32, #tpu.memory_space<vmem>>, vector<200x6xf32>
    tpu.vector_store %arg7[%c0_15, %c0_16], %16 {strides = array<i32>} : memref<200x6xf32, #tpu.memory_space<vmem>>, vector<200x6xf32>,
    return
  }
  func.func @transform_0(%arg0: i32) -> (i32, i32) {
    %c0_i32 = arith.constant 0 : i32
    %c0_i32_0 = arith.constant 0 : i32
    return %arg0, %c0_i32 : i32, i32
  }
  func.func @transform_1(%arg0: i32) -> (i32, i32) {
    %c0_i32 = arith.constant 0 : i32
    %c0_i32_0 = arith.constant 0 : i32
    return %arg0, %c0_i32 : i32, i32
  }
  func.func @transform_2(%arg0: i32) -> (i32, i32) {
    %c0_i32 = arith.constant 0 : i32
    %c0_i32_0 = arith.constant 0 : i32
    return %arg0, %c0_i32 : i32, i32
  }
  func.func @transform_3(%arg0: i32) -> (i32, i32) {
    %c0_i32 = arith.constant 0 : i32
    %c0_i32_0 = arith.constant 0 : i32
    return %arg0, %c0_i32 : i32, i32
  }
  func.func @transform_4(%arg0: i32) -> (i32, i32) {
    %c0_i32 = arith.constant 0 : i32
    %c0_i32_0 = arith.constant 0 : i32
    %c0_i32_1 = arith.constant 0 : i32
    return %c0_i32, %c0_i32_0 : i32, i32
  }
  func.func @transform_5(%arg0: i32) -> (i32, i32) {
    %c0_i32 = arith.constant 0 : i32
    %c0_i32_0 = arith.constant 0 : i32
    %c0_i32_1 = arith.constant 0 : i32
    return %c0_i32, %c0_i32_0 : i32, i32
  }
  func.func @transform_6(%arg0: i32) -> (i32, i32) {
    %c0_i32 = arith.constant 0 : i32
    %c0_i32_0 = arith.constant 0 : i32
    return %arg0, %c0_i32 : i32, i32
  }
}

module attributes {stable_mosaic.version = 11 : i64} {
  func.func @_conv_relu_pool_kernel(%arg0: i32, %arg1: memref<32x256xbf16, #tpu.memory_space<vmem>>, %arg2: memref<32x256xbf16, #tpu.memory_space<vmem>>, %arg3: memref<32x256xbf16, #tpu.memory_space<vmem>>, %arg4: memref<32x256xbf16, #tpu.memory_space<vmem>>, %arg5: memref<256x16xbf16, #tpu.memory_space<vmem>>, %arg6: memref<1x16xf32, #tpu.memory_space<vmem>>, %arg7: memref<32x16xf32, #tpu.memory_space<vmem>>) attributes {dimension_semantics = [#tpu.dimension_semantics<parallel>], iteration_bounds = array<i64: 2>, scalar_prefetch = 0 : i64, scratch_operands = 0 : i64, tpu.core_type = #tpu.core_type<tc>, window_params = [{transform_indices = @transform_0, window_bounds = array<i64: 32, 256>}, {transform_indices = @transform_1, window_bounds = array<i64: 32, 256>}, {transform_indices = @transform_2, window_bounds = array<i64: 32, 256>}, {transform_indices = @transform_3, window_bounds = array<i64: 32, 256>}, {pipeline_mode = #tpu.pipeline_mode<synchronous>, transform_indices = @transform_4, window_bounds = array<i64: 256, 16>}, {pipeline_mode = #tpu.pipeline_mode<synchronous>, transform_indices = @transform_5, window_bounds = array<i64: 1, 16>}, {transform_indices = @transform_6, window_bounds = array<i64: 32, 16>}]} {
    %c0 = arith.constant 0 : index
    %c0_0 = arith.constant 0 : index
    %0 = vector.load %arg5[%c0, %c0_0] : memref<256x16xbf16, #tpu.memory_space<vmem>>, vector<256x16xbf16>
    %c0_1 = arith.constant 0 : index
    %c0_2 = arith.constant 0 : index
    %1 = vector.load %arg1[%c0_1, %c0_2] : memref<32x256xbf16, #tpu.memory_space<vmem>>, vector<32x256xbf16>
    %cst = arith.constant dense<0.000000e+00> : vector<32x16xf32>
    %2 = tpu.matmul %1, %0, %cst {dimension_numbers = #tpu.dot_dimension_numbers<[1], [0], [0], [1], [0, 0, 1, 1], [], []>} : vector<32x256xbf16>, vector<256x16xbf16>, vector<32x16xf32> -> vector<32x16xf32>
    %c0_3 = arith.constant 0 : index
    %c0_4 = arith.constant 0 : index
    %3 = vector.load %arg2[%c0_3, %c0_4] : memref<32x256xbf16, #tpu.memory_space<vmem>>, vector<32x256xbf16>
    %cst_5 = arith.constant dense<0.000000e+00> : vector<32x16xf32>
    %4 = tpu.matmul %3, %0, %cst_5 {dimension_numbers = #tpu.dot_dimension_numbers<[1], [0], [0], [1], [0, 0, 1, 1], [], []>} : vector<32x256xbf16>, vector<256x16xbf16>, vector<32x16xf32> -> vector<32x16xf32>
    %5 = arith.maximumf %2, %4 : vector<32x16xf32>
    %c0_6 = arith.constant 0 : index
    %c0_7 = arith.constant 0 : index
    %6 = vector.load %arg3[%c0_6, %c0_7] : memref<32x256xbf16, #tpu.memory_space<vmem>>, vector<32x256xbf16>
    %cst_8 = arith.constant dense<0.000000e+00> : vector<32x16xf32>
    %7 = tpu.matmul %6, %0, %cst_8 {dimension_numbers = #tpu.dot_dimension_numbers<[1], [0], [0], [1], [0, 0, 1, 1], [], []>} : vector<32x256xbf16>, vector<256x16xbf16>, vector<32x16xf32> -> vector<32x16xf32>
    %8 = arith.maximumf %5, %7 : vector<32x16xf32>
    %c0_9 = arith.constant 0 : index
    %c0_10 = arith.constant 0 : index
    %9 = vector.load %arg4[%c0_9, %c0_10] : memref<32x256xbf16, #tpu.memory_space<vmem>>, vector<32x256xbf16>
    %cst_11 = arith.constant dense<0.000000e+00> : vector<32x16xf32>
    %10 = tpu.matmul %9, %0, %cst_11 {dimension_numbers = #tpu.dot_dimension_numbers<[1], [0], [0], [1], [0, 0, 1, 1], [], []>} : vector<32x256xbf16>, vector<256x16xbf16>, vector<32x16xf32> -> vector<32x16xf32>
    %11 = arith.maximumf %8, %10 : vector<32x16xf32>
    %c0_12 = arith.constant 0 : index
    %c0_13 = arith.constant 0 : index
    %12 = vector.load %arg6[%c0_12, %c0_13] : memref<1x16xf32, #tpu.memory_space<vmem>>, vector<1x16xf32>
    %13 = vector.broadcast %12 : vector<1x16xf32> to vector<32x16xf32>
    %14 = arith.addf %11, %13 : vector<32x16xf32>
    %cst_14 = arith.constant 0.000000e+00 : f32
    %15 = vector.broadcast %cst_14 : f32 to vector<32x16xf32>
    %16 = arith.maximumf %14, %15 : vector<32x16xf32>
    %c0_15 = arith.constant 0 : index
    %c0_16 = arith.constant 0 : index
    %17 = vector.load %arg7[%c0_15, %c0_16] : memref<32x16xf32, #tpu.memory_space<vmem>>, vector<32x16xf32>
    tpu.vector_store %arg7[%c0_15, %c0_16], %16 {strides = array<i32>} : memref<32x16xf32, #tpu.memory_space<vmem>>, vector<32x16xf32>,
    return
  }
  func.func @transform_0(%arg0: i32) -> (i32, i32) {
    %c0_i32 = arith.constant 0 : i32
    %c0_i32_0 = arith.constant 0 : i32
    return %arg0, %c0_i32 : i32, i32
  }
  func.func @transform_1(%arg0: i32) -> (i32, i32) {
    %c0_i32 = arith.constant 0 : i32
    %c0_i32_0 = arith.constant 0 : i32
    return %arg0, %c0_i32 : i32, i32
  }
  func.func @transform_2(%arg0: i32) -> (i32, i32) {
    %c0_i32 = arith.constant 0 : i32
    %c0_i32_0 = arith.constant 0 : i32
    return %arg0, %c0_i32 : i32, i32
  }
  func.func @transform_3(%arg0: i32) -> (i32, i32) {
    %c0_i32 = arith.constant 0 : i32
    %c0_i32_0 = arith.constant 0 : i32
    return %arg0, %c0_i32 : i32, i32
  }
  func.func @transform_4(%arg0: i32) -> (i32, i32) {
    %c0_i32 = arith.constant 0 : i32
    %c0_i32_0 = arith.constant 0 : i32
    %c0_i32_1 = arith.constant 0 : i32
    return %c0_i32, %c0_i32_0 : i32, i32
  }
  func.func @transform_5(%arg0: i32) -> (i32, i32) {
    %c0_i32 = arith.constant 0 : i32
    %c0_i32_0 = arith.constant 0 : i32
    %c0_i32_1 = arith.constant 0 : i32
    return %c0_i32, %c0_i32_0 : i32, i32
  }
  func.func @transform_6(%arg0: i32) -> (i32, i32) {
    %c0_i32 = arith.constant 0 : i32
    %c0_i32_0 = arith.constant 0 : i32
    return %arg0, %c0_i32 : i32, i32
  }
}

module attributes {stable_mosaic.version = 11 : i64} {
  func.func @_mlp_head_kernel(%arg0: i32, %arg1: memref<8x512xbf16, #tpu.memory_space<vmem>>, %arg2: memref<512x128xbf16, #tpu.memory_space<vmem>>, %arg3: memref<1x128xf32, #tpu.memory_space<vmem>>, %arg4: memref<128x128xbf16, #tpu.memory_space<vmem>>, %arg5: memref<1x128xf32, #tpu.memory_space<vmem>>, %arg6: memref<128x10xbf16, #tpu.memory_space<vmem>>, %arg7: memref<1x10xf32, #tpu.memory_space<vmem>>, %arg8: memref<8x10xf32, #tpu.memory_space<vmem>>) attributes {dimension_semantics = [#tpu.dimension_semantics<parallel>], iteration_bounds = array<i64: 1>, scalar_prefetch = 0 : i64, scratch_operands = 0 : i64, tpu.core_type = #tpu.core_type<tc>, window_params = [{transform_indices = @transform_0, window_bounds = array<i64: 8, 512>}, {pipeline_mode = #tpu.pipeline_mode<synchronous>, transform_indices = @transform_1, window_bounds = array<i64: 512, 128>}, {pipeline_mode = #tpu.pipeline_mode<synchronous>, transform_indices = @transform_2, window_bounds = array<i64: 1, 128>}, {pipeline_mode = #tpu.pipeline_mode<synchronous>, transform_indices = @transform_3, window_bounds = array<i64: 128, 128>}, {pipeline_mode = #tpu.pipeline_mode<synchronous>, transform_indices = @transform_4, window_bounds = array<i64: 1, 128>}, {pipeline_mode = #tpu.pipeline_mode<synchronous>, transform_indices = @transform_5, window_bounds = array<i64: 128, 10>}, {pipeline_mode = #tpu.pipeline_mode<synchronous>, transform_indices = @transform_6, window_bounds = array<i64: 1, 10>}, {transform_indices = @transform_7, window_bounds = array<i64: 8, 10>}]} {
    %c0 = arith.constant 0 : index
    %c0_0 = arith.constant 0 : index
    %0 = vector.load %arg1[%c0, %c0_0] : memref<8x512xbf16, #tpu.memory_space<vmem>>, vector<8x512xbf16>
    %c0_1 = arith.constant 0 : index
    %c0_2 = arith.constant 0 : index
    %1 = vector.load %arg2[%c0_1, %c0_2] : memref<512x128xbf16, #tpu.memory_space<vmem>>, vector<512x128xbf16>
    %cst = arith.constant dense<0.000000e+00> : vector<8x128xf32>
    %2 = tpu.matmul %0, %1, %cst {dimension_numbers = #tpu.dot_dimension_numbers<[1], [0], [0], [1], [0, 0, 1, 1], [], []>} : vector<8x512xbf16>, vector<512x128xbf16>, vector<8x128xf32> -> vector<8x128xf32>
    %c0_3 = arith.constant 0 : index
    %c0_4 = arith.constant 0 : index
    %3 = vector.load %arg3[%c0_3, %c0_4] : memref<1x128xf32, #tpu.memory_space<vmem>>, vector<1x128xf32>
    %4 = vector.broadcast %3 : vector<1x128xf32> to vector<8x128xf32>
    %5 = arith.addf %2, %4 : vector<8x128xf32>
    %cst_5 = arith.constant 0.000000e+00 : f32
    %6 = vector.broadcast %cst_5 : f32 to vector<8x128xf32>
    %7 = arith.maximumf %5, %6 : vector<8x128xf32>
    %8 = arith.truncf %7 : vector<8x128xf32> to vector<8x128xbf16>
    %c0_6 = arith.constant 0 : index
    %c0_7 = arith.constant 0 : index
    %9 = vector.load %arg4[%c0_6, %c0_7] : memref<128x128xbf16, #tpu.memory_space<vmem>>, vector<128x128xbf16>
    %cst_8 = arith.constant dense<0.000000e+00> : vector<8x128xf32>
    %10 = tpu.matmul %8, %9, %cst_8 {dimension_numbers = #tpu.dot_dimension_numbers<[1], [0], [0], [1], [0, 0, 1, 1], [], []>} : vector<8x128xbf16>, vector<128x128xbf16>, vector<8x128xf32> -> vector<8x128xf32>
    %c0_9 = arith.constant 0 : index
    %c0_10 = arith.constant 0 : index
    %11 = vector.load %arg5[%c0_9, %c0_10] : memref<1x128xf32, #tpu.memory_space<vmem>>, vector<1x128xf32>
    %12 = vector.broadcast %11 : vector<1x128xf32> to vector<8x128xf32>
    %13 = arith.addf %10, %12 : vector<8x128xf32>
    %cst_11 = arith.constant 0.000000e+00 : f32
    %14 = vector.broadcast %cst_11 : f32 to vector<8x128xf32>
    %15 = arith.maximumf %13, %14 : vector<8x128xf32>
    %16 = arith.truncf %15 : vector<8x128xf32> to vector<8x128xbf16>
    %c0_12 = arith.constant 0 : index
    %c0_13 = arith.constant 0 : index
    %17 = vector.load %arg6[%c0_12, %c0_13] : memref<128x10xbf16, #tpu.memory_space<vmem>>, vector<128x10xbf16>
    %cst_14 = arith.constant dense<0.000000e+00> : vector<8x10xf32>
    %18 = tpu.matmul %16, %17, %cst_14 {dimension_numbers = #tpu.dot_dimension_numbers<[1], [0], [0], [1], [0, 0, 1, 1], [], []>} : vector<8x128xbf16>, vector<128x10xbf16>, vector<8x10xf32> -> vector<8x10xf32>
    %c0_15 = arith.constant 0 : index
    %c0_16 = arith.constant 0 : index
    %19 = vector.load %arg7[%c0_15, %c0_16] : memref<1x10xf32, #tpu.memory_space<vmem>>, vector<1x10xf32>
    %20 = vector.broadcast %19 : vector<1x10xf32> to vector<8x10xf32>
    %21 = arith.addf %18, %20 : vector<8x10xf32>
    %c0_17 = arith.constant 0 : index
    %c0_18 = arith.constant 0 : index
    %22 = vector.load %arg8[%c0_17, %c0_18] : memref<8x10xf32, #tpu.memory_space<vmem>>, vector<8x10xf32>
    tpu.vector_store %arg8[%c0_17, %c0_18], %21 {strides = array<i32>} : memref<8x10xf32, #tpu.memory_space<vmem>>, vector<8x10xf32>,
    return
  }
  func.func @transform_0(%arg0: i32) -> (i32, i32) {
    %c0_i32 = arith.constant 0 : i32
    %c0_i32_0 = arith.constant 0 : i32
    return %arg0, %c0_i32 : i32, i32
  }
  func.func @transform_1(%arg0: i32) -> (i32, i32) {
    %c0_i32 = arith.constant 0 : i32
    %c0_i32_0 = arith.constant 0 : i32
    %c0_i32_1 = arith.constant 0 : i32
    return %c0_i32, %c0_i32_0 : i32, i32
  }
  func.func @transform_2(%arg0: i32) -> (i32, i32) {
    %c0_i32 = arith.constant 0 : i32
    %c0_i32_0 = arith.constant 0 : i32
    %c0_i32_1 = arith.constant 0 : i32
    return %c0_i32, %c0_i32_0 : i32, i32
  }
  func.func @transform_3(%arg0: i32) -> (i32, i32) {
    %c0_i32 = arith.constant 0 : i32
    %c0_i32_0 = arith.constant 0 : i32
    %c0_i32_1 = arith.constant 0 : i32
    return %c0_i32, %c0_i32_0 : i32, i32
  }
  func.func @transform_4(%arg0: i32) -> (i32, i32) {
    %c0_i32 = arith.constant 0 : i32
    %c0_i32_0 = arith.constant 0 : i32
    %c0_i32_1 = arith.constant 0 : i32
    return %c0_i32, %c0_i32_0 : i32, i32
  }
  func.func @transform_5(%arg0: i32) -> (i32, i32) {
    %c0_i32 = arith.constant 0 : i32
    %c0_i32_0 = arith.constant 0 : i32
    %c0_i32_1 = arith.constant 0 : i32
    return %c0_i32, %c0_i32_0 : i32, i32
  }
  func.func @transform_6(%arg0: i32) -> (i32, i32) {
    %c0_i32 = arith.constant 0 : i32
    %c0_i32_0 = arith.constant 0 : i32
    %c0_i32_1 = arith.constant 0 : i32
    return %c0_i32, %c0_i32_0 : i32, i32
  }
  func.func @transform_7(%arg0: i32) -> (i32, i32) {
    %c0_i32 = arith.constant 0 : i32
    %c0_i32_0 = arith.constant 0 : i32
    return %arg0, %c0_i32 : i32, i32
  }
}

</mosaic_0001>

<bundles_post_ra>
// kernel: cnn_net_forward.3
= control target key start
LH: loop header
LB: loop body
LE: loop exit
PB: predicated region body
PF: predicated region fallthrough
CT: control target
= control target key end

     0   :  { %s2128_s21 = smov 0   ;;  %s2697_s0 = inlined_call_operand.vmem [shape: bf16[400,128], index: 0, kind: input, shape index: {}]   ;;  %s2698_s1 = inlined_call_operand.vmem [shape: bf16[400,128], index: 1, kind: input, shape index: {}]   ;;  %s2699_s2 = inlined_call_operand.vmem [shape: bf16[400,128], index: 2, kind: input, shape index: {}]   ;;  %s2700_s3 = inlined_call_operand.vmem [shape: bf16[400,128], index: 3, kind: input, shape index: {}]   ;;  %s2701_s4 = inlined_call_operand.vmem [shape: bf16[128,6], index: 4, kind: input, shape index: {}]   ;;  %s2702_s5 = inlined_call_operand.vmem [shape: f32[1,6], index: 5, kind: input, shape index: {}]   ;;  %s2703_s6 = inlined_call_operand.vmem [shape: f32[400,6], index: 6, kind: output, shape index: {}]  }
   0x1 LB: > { %s1584_s22 = sadd.s32 4294967295, %s2089_s21   ;;  %p1588_p0 = scmp.ge.s32.totalorder %s2089_s21, 1  ;;  %s2089_s21 = sphi %s2128_s21, %s16_s21  }
   0x2   : > { %p246_p1 = scmp.lt.s32.totalorder %s2089_s21, 3 }
   0x4   : > { %p247_p2 = pnand %p1588_p0, %p246_p1 }
   0x5   : > { %v2023_v0 = vld [vmem:[%s2701_s4] sm:$0xff] (!%p247_p2)   ;;  %v2091_v1 = vmov (!%p247_p2), 0.0   ;;  %v2024_v2 = vld [vmem:[%s2701_s4 + $0x8] sm:$0xff] (!%p247_p2)   ;;  %s291_s27 = smul.u32 (!%p247_p2), 25, %s1584_s22  ;;  %vm2092_vm0 = vmmov (!%p247_p2), 0   ;;  %v2025_v3 = vld [vmem:[%s2701_s4 + $0x10] sm:$0xff] (!%p247_p2)  }
   0x6   : > { %250 = sbr.rel (%p247_p2) target bundleno = 459 (0x1cb), region = 44  ;;  %1741 = vmatprep.subr.bf16.mxu0 (!%p247_p2), %v2091_v1  ;;  %1809 = vmatprep.subr.bf16.mxu1 (!%p247_p2), %v2091_v1  ;;  %v2026_v4 = vld [vmem:[%s2701_s4 + $0x18] sm:$0xff] (!%p247_p2)   ;;  %v2027_v5 = vld [vmem:[%s2701_s4 + $0x20] sm:$0xff] (!%p247_p2)   ;;  %v2028_v6 = vld [vmem:[%s2701_s4 + $0x28] sm:$0xff] (!%p247_p2)   ;;  %vm1466_vm1 = vcmask (!%p247_p2), 48128  }
   0x7   : > { %1742 = vmatpush3.bf16.msra.mxu0 (!%p247_p2), %v2023_v0  ;;  %1810 = vmatpush3.bf16.msra.mxu1 (!%p247_p2), %v2023_v0  ;;  %p292_p3 = scmp.lt.s32.totalorder (!%p247_p2), %s291_s27, 49  ;;  %v2029_v7 = vld [vmem:[%s2701_s4 + $0x30] sm:$0xff] (!%p247_p2)   ;;  %v2195_v8 = vld [vmem:[%s2701_s4 + $0x38] sm:$0xff] (!%p247_p2)  }
   0x8   : > { %1743 = vmatprep.subr.bf16.mxu0 (!%p247_p2), %v2091_v1  ;;  %1811 = vmatprep.subr.bf16.mxu1 (!%p247_p2), %v2091_v1 }
   0x9   : > { %1757 = vmatprep.mubr.msk.bf16.mxu0 (!%p247_p2), %vm2092_vm0, %v2091_v1  ;;  %1825 = vmatprep.mubr.msk.bf16.mxu1 (!%p247_p2), %vm2092_vm0, %v2091_v1 }
   0xb   : > { %1744 = vmatpush3.bf16.msra.mxu0 (!%p247_p2), %v2024_v2  ;;  %1812 = vmatpush3.bf16.msra.mxu1 (!%p247_p2), %v2024_v2 }
   0xc   : > { %1745 = vmatprep.subr.bf16.mxu0 (!%p247_p2), %v2091_v1  ;;  %1813 = vmatprep.subr.bf16.mxu1 (!%p247_p2), %v2091_v1 }
   0xd   : > { %s2729_s27 = smov (!%p292_p3, %s291_s27), 49 }
   0xe   : > { %s2158_s30 = sshll.u32 %s2729_s27, 2 }
   0xf   : > { %s2164_s9 = scalar_lea.vmem %s2697_s0, %s2158_s30  ;;  %1746 = vmatpush3.bf16.msra.mxu0 %v2025_v3  ;;  %1814 = vmatpush3.bf16.msra.mxu1 %v2025_v3  ;;  %s2173_s14 = scalar_lea.vmem %s2698_s1, %s2158_s30 }
  0x10   : > { %1747 = vmatprep.subr.bf16.mxu0 %v2091_v1  ;;  %1815 = vmatprep.subr.bf16.mxu1 %v2091_v1  ;;  %v2031_v9 = vld [vmem:[%s2164_s9] sm:$0xff]   ;;  %s2209_s26 = scalar_lea.vmem %s2699_s2, %s2158_s30  ;;  %s2219_s7 = scalar_lea.vmem %s2700_s3, %s2158_s30  ;;  %v2033_v11 = vld [vmem:[%s2164_s9 + $0x8] sm:$0xff]   ;;  %v2035_v13 = vld [vmem:[%s2164_s9 + $0x10] sm:$0xff]  }
  0x11   : > { %v2032_v10 = vld [vmem:[%s2173_s14] sm:$0xff]   ;;  %v2034_v12 = vld [vmem:[%s2173_s14 + $0x8] sm:$0xff]   ;;  %v2036_v14 = vld [vmem:[%s2173_s14 + $0x10] sm:$0xff]  }
  0x12   : > { %v2037_v15 = vld [vmem:[%s2164_s9 + $0x18] sm:$0xff]   ;;  %v2039_v17 = vld [vmem:[%s2164_s9 + $0x20] sm:$0xff]   ;;  %v2041_v19 = vld [vmem:[%s2164_s9 + $0x28] sm:$0xff]  }
  0x13   : > { %1748 = vmatpush3.bf16.msra.mxu0 %v2026_v4  ;;  %1816 = vmatpush3.bf16.msra.mxu1 %v2026_v4  ;;  %v2038_v16 = vld [vmem:[%s2173_s14 + $0x18] sm:$0xff]   ;;  %v2040_v18 = vld [vmem:[%s2173_s14 + $0x20] sm:$0xff]   ;;  %v2042_v20 = vld [vmem:[%s2173_s14 + $0x28] sm:$0xff]  }
  0x14   : > { %1749 = vmatprep.subr.bf16.mxu0 %v2091_v1  ;;  %1817 = vmatprep.subr.bf16.mxu1 %v2091_v1  ;;  %v2043_v21 = vld [vmem:[%s2164_s9 + $0x30] sm:$0xff]   ;;  %v2045_v23 = vld [vmem:[%s2164_s9 + $0x38] sm:$0xff]   ;;  %v2047_v25 = vld [vmem:[%s2164_s9 + $0x40] sm:$0xff]  }
  0x15   : > { %v2044_v22 = vld [vmem:[%s2173_s14 + $0x30] sm:$0xff]   ;;  %v2046_v24 = vld [vmem:[%s2173_s14 + $0x38] sm:$0xff]   ;;  %v2048_v26 = vld [vmem:[%s2173_s14 + $0x40] sm:$0xff]  }
  0x16   : > { %v2049_v27 = vld [vmem:[%s2164_s9 + $0x48] sm:$0xff]   ;;  %v2051_v29 = vld [vmem:[%s2164_s9 + $0x50] sm:$0xff]   ;;  %v2053_v31 = vld [vmem:[%s2164_s9 + $0x58] sm:$0xff]  }
  0x17   : > { %1750 = vmatpush3.bf16.msra.mxu0 %v2027_v5  ;;  %1818 = vmatpush3.bf16.msra.mxu1 %v2027_v5  ;;  %v2050_v28 = vld [vmem:[%s2173_s14 + $0x48] sm:$0xff]   ;;  %v2052_v30 = vld [vmem:[%s2173_s14 + $0x50] sm:$0xff]   ;;  %v2054_v32 = vld [vmem:[%s2173_s14 + $0x58] sm:$0xff]  }
  0x18   : > { %1751 = vmatprep.subr.bf16.mxu0 %v2091_v1  ;;  %1819 = vmatprep.subr.bf16.mxu1 %v2091_v1  ;;  %v2055_v33 = vld [vmem:[%s2164_s9 + $0x60] ss:$0 sps:$4 sm:$0xff]   ;;  %v2059_v37 = vld [vmem:[%s2209_s26 + $0x8] sm:$0xff]   ;;  %v2061_v39 = vld [vmem:[%s2209_s26 + $0x10] sm:$0xff]   ;;  %s1593_s9 = sshll.u32 %s2729_s27, 3 }
  0x19   : > { %v2056_v34 = vld [vmem:[%s2173_s14 + $0x60] ss:$0 sps:$4 sm:$0xff]   ;;  %v2060_v38 = vld [vmem:[%s2219_s7 + $0x8] sm:$0xff]   ;;  %v2062_v40 = vld [vmem:[%s2219_s7 + $0x10] sm:$0xff]   ;;  %s2549_s12 = scalar_lea.vmem %s2703_s6, %s1593_s9 }
  0x1a   : > { %v2057_v35 = vld [vmem:[%s2209_s26] sm:$0xff]   ;;  %v2063_v41 = vld [vmem:[%s2209_s26 + $0x18] sm:$0xff]   ;;  %v2067_v45 = vld [vmem:[%s2209_s26 + $0x28] sm:$0xff]  }
  0x1b   : > { %1752 = vmatpush3.bf16.msra.mxu0 %v2028_v6  ;;  %1820 = vmatpush3.bf16.msra.mxu1 %v2028_v6  ;;  %v2058_v36 = vld [vmem:[%s2219_s7] sm:$0xff]   ;;  %v2064_v42 = vld [vmem:[%s2219_s7 + $0x18] sm:$0xff]   ;;  %v2068_v46 = vld [vmem:[%s2219_s7 + $0x28] sm:$0xff]  }
  0x1c   : > { %1753 = vmatprep.subr.bf16.mxu0 %v2091_v1  ;;  %1821 = vmatprep.subr.bf16.mxu1 %v2091_v1  ;;  %v2065_v43 = vld [vmem:[%s2209_s26 + $0x20] sm:$0xff]   ;;  %v2069_v47 = vld [vmem:[%s2209_s26 + $0x30] sm:$0xff]   ;;  %v2071_v49 = vld [vmem:[%s2209_s26 + $0x38] sm:$0xff]  }
  0x1d   : > { %v2066_v44 = vld [vmem:[%s2219_s7 + $0x20] sm:$0xff]   ;;  %v2070_v48 = vld [vmem:[%s2219_s7 + $0x30] sm:$0xff]   ;;  %v2072_v50 = vld [vmem:[%s2219_s7 + $0x38] sm:$0xff]  }
  0x1e   : > { %v2073_v51 = vld [vmem:[%s2209_s26 + $0x40] sm:$0xff]   ;;  %v2075_v53 = vld [vmem:[%s2209_s26 + $0x48] sm:$0xff]   ;;  %v2077_v55 = vld [vmem:[%s2209_s26 + $0x50] sm:$0xff]  }
  0x1f   : > { %1754 = vmatpush3.bf16.msra.mxu0 %v2029_v7  ;;  %1822 = vmatpush3.bf16.msra.mxu1 %v2029_v7  ;;  %v2074_v52 = vld [vmem:[%s2219_s7 + $0x40] sm:$0xff]   ;;  %v2076_v54 = vld [vmem:[%s2219_s7 + $0x48] sm:$0xff]   ;;  %v2078_v56 = vld [vmem:[%s2219_s7 + $0x50] sm:$0xff]  }
  0x20   : > { %1755 = vmatprep.subr.bf16.mxu0 %v2091_v1  ;;  %1823 = vmatprep.subr.bf16.mxu1 %v2091_v1  ;;  %v2079_v57 = vld [vmem:[%s2209_s26 + $0x58] sm:$0xff]   ;;  %v2081_v59 = vld [vmem:[%s2209_s26 + $0x60] ss:$0 sps:$4 sm:$0xff]  }
  0x21   : > { %v2080_v58 = vld [vmem:[%s2219_s7 + $0x58] sm:$0xff]   ;;  %v2082_v60 = vld [vmem:[%s2219_s7 + $0x60] ss:$0 sps:$4 sm:$0xff]  }
  0x23   : > { %1756 = vmatpush3.bf16.msra.mxu0 %v2195_v8  ;;  %1824 = vmatpush3.bf16.msra.mxu1 %v2195_v8 }
  0x24   : > { %1877 = vmatprep.subr.bf16.mxu0 %v2091_v1  ;;  %1945 = vmatprep.subr.bf16.mxu1 %v2091_v1 }
  0x26   : > { %1758 = vmatmul.mubr.bf16.vlgmr.msra.gmra.mrb[0].mxu0 %v2031_v9  ;;  %1826 = vmatmul.mubr.bf16.vlgmr.msra.gmra.mrb[0].mxu1 %v2032_v10 }
  0x27   : > { %1878 = vmatpush3.bf16.msra.mxu0 %v2023_v0  ;;  %1946 = vmatpush3.bf16.msra.mxu1 %v2023_v0 }
  0x28   : > { %1761 = vmatprep.mubr.msk.bf16.mxu0 %vm2092_vm0, %v2091_v1  ;;  %1829 = vmatprep.mubr.msk.bf16.mxu1 %vm2092_vm0, %v2091_v1 }
  0x29   : > { %1879 = vmatprep.subr.bf16.mxu0 %v2091_v1  ;;  %1947 = vmatprep.subr.bf16.mxu1 %v2091_v1 }
  0x2b   : > { %1880 = vmatpush3.bf16.msra.mxu0 %v2024_v2  ;;  %1948 = vmatpush3.bf16.msra.mxu1 %v2024_v2 }
  0x2c   : > { %1881 = vmatprep.subr.bf16.mxu0 %v2091_v1  ;;  %1949 = vmatprep.subr.bf16.mxu1 %v2091_v1 }
  0x2e   : > { %1762 = vmatmul.mubr.bf16.gmra.mrb[4].mxu0 %v2033_v11  ;;  %1830 = vmatmul.mubr.bf16.gmra.mrb[4].mxu1 %v2034_v12 }
  0x2f   : > { %1765 = vmatprep.mubr.msk.bf16.mxu0 %vm2092_vm0, %v2091_v1  ;;  %1833 = vmatprep.mubr.msk.bf16.mxu1 %vm2092_vm0, %v2091_v1 }
  0x30   : > { %1882 = vmatpush3.bf16.msra.mxu0 %v2025_v3  ;;  %1950 = vmatpush3.bf16.msra.mxu1 %v2025_v3 }
  0x31   : > { %1883 = vmatprep.subr.bf16.mxu0 %v2091_v1  ;;  %1951 = vmatprep.subr.bf16.mxu1 %v2091_v1 }
  0x34   : > { %1884 = vmatpush3.bf16.msra.mxu0 %v2026_v4  ;;  %1952 = vmatpush3.bf16.msra.mxu1 %v2026_v4 }
  0x35   : > { %1885 = vmatprep.subr.bf16.mxu0 %v2091_v1  ;;  %1953 = vmatprep.subr.bf16.mxu1 %v2091_v1 }
  0x36   : > { %1766 = vmatmul.mubr.bf16.gmra.mrb[8].mxu0 %v2035_v13  ;;  %1834 = vmatmul.mubr.bf16.gmra.mrb[8].mxu1 %v2036_v14 }
  0x37   : > { %1769 = vmatprep.mubr.msk.bf16.mxu0 %vm2092_vm0, %v2091_v1  ;;  %1837 = vmatprep.mubr.msk.bf16.mxu1 %vm2092_vm0, %v2091_v1 }
  0x38   : > { %1886 = vmatpush3.bf16.msra.mxu0 %v2027_v5  ;;  %1954 = vmatpush3.bf16.msra.mxu1 %v2027_v5 }
  0x39   : > { %1887 = vmatprep.subr.bf16.mxu0 %v2091_v1  ;;  %1955 = vmatprep.subr.bf16.mxu1 %v2091_v1 }
  0x3c   : > { %1888 = vmatpush3.bf16.msra.mxu0 %v2028_v6  ;;  %1956 = vmatpush3.bf16.msra.mxu1 %v2028_v6 }
  0x3d   : > { %1889 = vmatprep.subr.bf16.mxu0 %v2091_v1  ;;  %1957 = vmatprep.subr.bf16.mxu1 %v2091_v1 }
  0x3e   : > { %1770 = vmatmul.mubr.bf16.gmra.mrb[12].mxu0 %v2037_v15  ;;  %1838 = vmatmul.mubr.bf16.gmra.mrb[12].mxu1 %v2038_v16 }
  0x3f   : > { %1773 = vmatprep.mubr.msk.bf16.mxu0 %vm2092_vm0, %v2091_v1  ;;  %1841 = vmatprep.mubr.msk.bf16.mxu1 %vm2092_vm0, %v2091_v1 }
  0x40   : > { %1890 = vmatpush3.bf16.msra.mxu0 %v2029_v7  ;;  %1958 = vmatpush3.bf16.msra.mxu1 %v2029_v7 }
  0x41   : > { %1891 = vmatprep.subr.bf16.mxu0 %v2091_v1  ;;  %1959 = vmatprep.subr.bf16.mxu1 %v2091_v1 }
  0x44   : > { %1892 = vmatpush3.bf16.msra.mxu0 %v2195_v8  ;;  %1960 = vmatpush3.bf16.msra.mxu1 %v2195_v8 }
  0x46   : > { %1774 = vmatmul.mubr.bf16.gmra.mrb[16].mxu0 %v2039_v17  ;;  %1842 = vmatmul.mubr.bf16.gmra.mrb[16].mxu1 %v2040_v18 }
  0x47   : > { %1777 = vmatprep.mubr.msk.bf16.mxu0 %vm2092_vm0, %v2091_v1  ;;  %1845 = vmatprep.mubr.msk.bf16.mxu1 %vm2092_vm0, %v2091_v1 }
  0x4e   : > { %1778 = vmatmul.mubr.bf16.gmra.mrb[20].mxu0 %v2041_v19  ;;  %1846 = vmatmul.mubr.bf16.gmra.mrb[20].mxu1 %v2042_v20 }
  0x4f   : > { %1781 = vmatprep.mubr.msk.bf16.mxu0 %vm2092_vm0, %v2091_v1  ;;  %1849 = vmatprep.mubr.msk.bf16.mxu1 %vm2092_vm0, %v2091_v1 }
  0x56   : > { %1782 = vmatmul.mubr.bf16.gmra.mrb[24].mxu0 %v2043_v21  ;;  %1850 = vmatmul.mubr.bf16.gmra.mrb[24].mxu1 %v2044_v22 }
  0x57   : > { %1785 = vmatprep.mubr.msk.bf16.mxu0 %vm2092_vm0, %v2091_v1  ;;  %1853 = vmatprep.mubr.msk.bf16.mxu1 %vm2092_vm0, %v2091_v1 }
  0x5e   : > { %1786 = vmatmul.mubr.bf16.gmra.mrb[28].mxu0 %v2045_v23  ;;  %1854 = vmatmul.mubr.bf16.gmra.mrb[28].mxu1 %v2046_v24 }
  0x5f   : > { %1789 = vmatprep.mubr.msk.bf16.mxu0 %vm2092_vm0, %v2091_v1  ;;  %1857 = vmatprep.mubr.msk.bf16.mxu1 %vm2092_vm0, %v2091_v1 }
  0x66   : > { %1790 = vmatmul.mubr.bf16.gmra.mrb[32].mxu0 %v2047_v25  ;;  %1858 = vmatmul.mubr.bf16.gmra.mrb[32].mxu1 %v2048_v26 }
  0x67   : > { %1793 = vmatprep.mubr.msk.bf16.mxu0 %vm2092_vm0, %v2091_v1  ;;  %1861 = vmatprep.mubr.msk.bf16.mxu1 %vm2092_vm0, %v2091_v1 }
  0x6e   : > { %1794 = vmatmul.mubr.bf16.gmra.mrb[36].mxu0 %v2049_v27  ;;  %1862 = vmatmul.mubr.bf16.gmra.mrb[36].mxu1 %v2050_v28 }
  0x6f   : > { %1797 = vmatprep.mubr.msk.bf16.mxu0 %vm2092_vm0, %v2091_v1  ;;  %1865 = vmatprep.mubr.msk.bf16.mxu1 %vm2092_vm0, %v2091_v1 }
  0x76   : > { %1798 = vmatmul.mubr.bf16.gmra.mrb[40].mxu0 %v2051_v29  ;;  %1866 = vmatmul.mubr.bf16.gmra.mrb[40].mxu1 %v2052_v30 }
  0x77   : > { %1801 = vmatprep.mubr.msk.bf16.mxu0 %vm2092_vm0, %v2091_v1  ;;  %1869 = vmatprep.mubr.msk.bf16.mxu1 %vm2092_vm0, %v2091_v1 }
  0x7e   : > { %1802 = vmatmul.mubr.bf16.gmra.mrb[44].mxu0 %v2053_v31  ;;  %1870 = vmatmul.mubr.bf16.gmra.mrb[44].mxu1 %v2054_v32 }
  0x7f   : > { %1805 = vmatprep.mubr.msk.bf16.mxu0 %vm2092_vm0, %v2091_v1  ;;  %1873 = vmatprep.mubr.msk.bf16.mxu1 %vm2092_vm0, %v2091_v1 }
  0x86   : > { %1806 = vmatmul.mubr.bf16.gmra.mrb[48].mxu0 %v2055_v33  ;;  %1874 = vmatmul.mubr.bf16.gmra.mrb[48].mxu1 %v2056_v34 }
  0x87   : > { %1893 = vmatprep.mubr.msk.bf16.mxu0 %vm2092_vm0, %v2091_v1  ;;  %1961 = vmatprep.mubr.msk.bf16.mxu1 %vm2092_vm0, %v2091_v1 }
  0x8e   : > { %1894 = vmatmul.mubr.bf16.vlgmr.msra.gmra.mrb[52].mxu0 %v2057_v35  ;;  %1962 = vmatmul.mubr.bf16.vlgmr.msra.gmra.mrb[52].mxu1 %v2058_v36 }
  0x8f   : > { %1897 = vmatprep.mubr.msk.bf16.mxu0 %vm2092_vm0, %v2091_v1  ;;  %1965 = vmatprep.mubr.msk.bf16.mxu1 %vm2092_vm0, %v2091_v1 }
  0x96   : > { %1898 = vmatmul.mubr.bf16.gmra.mrb[56].mxu0 %v2059_v37  ;;  %1966 = vmatmul.mubr.bf16.gmra.mrb[56].mxu1 %v2060_v38 }
  0x97   : > { %1901 = vmatprep.mubr.msk.bf16.mxu0 %vm2092_vm0, %v2091_v1  ;;  %1969 = vmatprep.mubr.msk.bf16.mxu1 %vm2092_vm0, %v2091_v1 }
  0x9e   : > { %1902 = vmatmul.mubr.bf16.gmra.mrb[60].mxu0 %v2061_v39  ;;  %1970 = vmatmul.mubr.bf16.gmra.mrb[60].mxu1 %v2062_v40 }
  0x9f   : > { %1905 = vmatprep.mubr.msk.bf16.mxu0 %vm2092_vm0, %v2091_v1  ;;  %1973 = vmatprep.mubr.msk.bf16.mxu1 %vm2092_vm0, %v2091_v1 }
  0xa6   : > { %1906 = vmatmul.mubr.bf16.gmra.mrb[64].mxu0 %v2063_v41  ;;  %1974 = vmatmul.mubr.bf16.gmra.mrb[64].mxu1 %v2064_v42 }
  0xa7   : > { %1909 = vmatprep.mubr.msk.bf16.mxu0 %vm2092_vm0, %v2091_v1  ;;  %1977 = vmatprep.mubr.msk.bf16.mxu1 %vm2092_vm0, %v2091_v1 }
  0xae   : > { %1910 = vmatmul.mubr.bf16.gmra.mrb[68].mxu0 %v2065_v43  ;;  %1978 = vmatmul.mubr.bf16.gmra.mrb[68].mxu1 %v2066_v44 }
  0xaf   : > { %1913 = vmatprep.mubr.msk.bf16.mxu0 %vm2092_vm0, %v2091_v1  ;;  %1981 = vmatprep.mubr.msk.bf16.mxu1 %vm2092_vm0, %v2091_v1 }
  0xb6   : > { %1914 = vmatmul.mubr.bf16.gmra.mrb[72].mxu0 %v2067_v45  ;;  %1982 = vmatmul.mubr.bf16.gmra.mrb[72].mxu1 %v2068_v46 }
  0xb7   : > { %1917 = vmatprep.mubr.msk.bf16.mxu0 %vm2092_vm0, %v2091_v1  ;;  %1985 = vmatprep.mubr.msk.bf16.mxu1 %vm2092_vm0, %v2091_v1 }
  0xbe   : > { %1918 = vmatmul.mubr.bf16.gmra.mrb[76].mxu0 %v2069_v47  ;;  %1986 = vmatmul.mubr.bf16.gmra.mrb[76].mxu1 %v2070_v48 }
  0xbf   : > { %1921 = vmatprep.mubr.msk.bf16.mxu0 %vm2092_vm0, %v2091_v1  ;;  %1989 = vmatprep.mubr.msk.bf16.mxu1 %vm2092_vm0, %v2091_v1 }
  0xc6   : > { %1922 = vmatmul.mubr.bf16.gmra.mrb[80].mxu0 %v2071_v49  ;;  %1990 = vmatmul.mubr.bf16.gmra.mrb[80].mxu1 %v2072_v50 }
  0xc7   : > { %1925 = vmatprep.mubr.msk.bf16.mxu0 %vm2092_vm0, %v2091_v1  ;;  %1993 = vmatprep.mubr.msk.bf16.mxu1 %vm2092_vm0, %v2091_v1 }
  0xce   : > { %1926 = vmatmul.mubr.bf16.gmra.mrb[84].mxu0 %v2073_v51  ;;  %1994 = vmatmul.mubr.bf16.gmra.mrb[84].mxu1 %v2074_v52 }
  0xcf   : > { %1929 = vmatprep.mubr.msk.bf16.mxu0 %vm2092_vm0, %v2091_v1  ;;  %1997 = vmatprep.mubr.msk.bf16.mxu1 %vm2092_vm0, %v2091_v1 }
  0xd6   : > { %1930 = vmatmul.mubr.bf16.gmra.mrb[88].mxu0 %v2075_v53  ;;  %1998 = vmatmul.mubr.bf16.gmra.mrb[88].mxu1 %v2076_v54 }
  0xd7   : > { %1933 = vmatprep.mubr.msk.bf16.mxu0 %vm2092_vm0, %v2091_v1  ;;  %2001 = vmatprep.mubr.msk.bf16.mxu1 %vm2092_vm0, %v2091_v1 }
  0xde   : > { %1934 = vmatmul.mubr.bf16.gmra.mrb[92].mxu0 %v2077_v55  ;;  %2002 = vmatmul.mubr.bf16.gmra.mrb[92].mxu1 %v2078_v56 }
  0xdf   : > { %1937 = vmatprep.mubr.msk.bf16.mxu0 %vm2092_vm0, %v2091_v1  ;;  %2005 = vmatprep.mubr.msk.bf16.mxu1 %vm2092_vm0, %v2091_v1 }
  0xe6   : > { %1938 = vmatmul.mubr.bf16.gmra.mrb[96].mxu0 %v2079_v57  ;;  %2006 = vmatmul.mubr.bf16.gmra.mrb[96].mxu1 %v2080_v58 }
  0xe7   : > { %1941 = vmatprep.mubr.msk.bf16.mxu0 %vm2092_vm0, %v2091_v1  ;;  %2009 = vmatprep.mubr.msk.bf16.mxu1 %vm2092_vm0, %v2091_v1  ;;  %v2539_v1 = vld [vmem:[%s2702_s5] ss:$0 sm:$0xff] }
  0xee   : > { %1942 = vmatmul.mubr.bf16.gmra.mrb[100].mxu0 %v2081_v59  ;;  %2010 = vmatmul.mubr.bf16.gmra.mrb[100].mxu1 %v2082_v60 }
  0xf9   : > { %v2383_v61 = vpop.f32.mrb[0].mxu0  ;;  %v2385_v62 = vpop.f32.mrb[0].mxu1 }
  0xfa   : > { %v860_v63 = vmax.f32 %v2383_v61, %v2385_v62  ;;  %v1759_v0 = vpop.f32.mrb[1].mxu0  ;;  %v1827_v2 = vpop.f32.mrb[1].mxu1 }
  0xfb   : > { %v2389_v3 = vpop.f32.mrb[2].mxu0  ;;  %v2391_v4 = vpop.f32.mrb[2].mxu1 }
  0xfc   : > { %v1760_v5 = vpop.f32.mrb[3].mxu0  ;;  %v1828_v6 = vpop.f32.mrb[3].mxu1 }
 0x101   : > { %v2395_v7 = vpop.f32.mrb[4].mxu0  ;;  %v2397_v8 = vpop.f32.mrb[4].mxu1 }
 0x102   : > { %v1763_v10 = vpop.f32.mrb[5].mxu0  ;;  %v1831_v11 = vpop.f32.mrb[5].mxu1 }
 0x103   : > { %v2401_v12 = vpop.f32.mrb[6].mxu0  ;;  %v2403_v13 = vpop.f32.mrb[6].mxu1 }
 0x104   : > { %v1764_v15 = vpop.f32.mrb[7].mxu0  ;;  %v1832_v16 = vpop.f32.mrb[7].mxu1 }
 0x109   : > { %v2407_v17 = vpop.f32.mrb[8].mxu0  ;;  %v2409_v18 = vpop.f32.mrb[8].mxu1 }
 0x10a   : > { %v1767_v20 = vpop.f32.mrb[9].mxu0  ;;  %v1835_v21 = vpop.f32.mrb[9].mxu1 }
 0x10b   : > { %v2413_v22 = vpop.f32.mrb[10].mxu0  ;;  %v2415_v23 = vpop.f32.mrb[10].mxu1 }
 0x10c   : > { %v1768_v25 = vpop.f32.mrb[11].mxu0  ;;  %v1836_v26 = vpop.f32.mrb[11].mxu1 }
 0x111   : > { %v2419_v27 = vpop.f32.mrb[12].mxu0  ;;  %v2421_v28 = vpop.f32.mrb[12].mxu1 }
 0x112   : > { %v1771_v30 = vpop.f32.mrb[13].mxu0  ;;  %v1839_v31 = vpop.f32.mrb[13].mxu1 }
 0x113   : > { %v2425_v32 = vpop.f32.mrb[14].mxu0  ;;  %v2427_v33 = vpop.f32.mrb[14].mxu1 }
 0x114   : > { %v1772_v35 = vpop.f32.mrb[15].mxu0  ;;  %v1840_v36 = vpop.f32.mrb[15].mxu1 }
 0x119   : > { %v2431_v37 = vpop.f32.mrb[16].mxu0  ;;  %v2433_v38 = vpop.f32.mrb[16].mxu1 }
 0x11a   : > { %v1775_v40 = vpop.f32.mrb[17].mxu0  ;;  %v1843_v41 = vpop.f32.mrb[17].mxu1 }
 0x11b   : > { %v2437_v42 = vpop.f32.mrb[18].mxu0  ;;  %v2439_v43 = vpop.f32.mrb[18].mxu1 }
 0x11c   : > { %v1776_v45 = vpop.f32.mrb[19].mxu0  ;;  %v1844_v46 = vpop.f32.mrb[19].mxu1 }
 0x121   : > { %v2443_v47 = vpop.f32.mrb[20].mxu0  ;;  %v2445_v48 = vpop.f32.mrb[20].mxu1 }
 0x122   : > { %v1779_v50 = vpop.f32.mrb[21].mxu0  ;;  %v1847_v51 = vpop.f32.mrb[21].mxu1 }
 0x123   : > { %v2449_v52 = vpop.f32.mrb[22].mxu0  ;;  %v2451_v53 = vpop.f32.mrb[22].mxu1 }
 0x124   : > { %v1780_v55 = vpop.f32.mrb[23].mxu0  ;;  %v1848_v56 = vpop.f32.mrb[23].mxu1 }
 0x129   : > { %v2455_v57 = vpop.f32.mrb[24].mxu0  ;;  %v2457_v58 = vpop.f32.mrb[24].mxu1 }
 0x12a   : > { %v1783_v60 = vpop.f32.mrb[25].mxu0  ;;  %v1851_v0 = vpop.f32.mrb[25].mxu1 }
 0x12b   : > { %v2461_v2 = vpop.f32.mrb[26].mxu0  ;;  %v2463_v5 = vpop.f32.mrb[26].mxu1 }
 0x12c   : > { %v1784_v10 = vpop.f32.mrb[27].mxu0  ;;  %v1852_v11 = vpop.f32.mrb[27].mxu1 }
 0x131   : > { %v2467_v15 = vpop.f32.mrb[28].mxu0  ;;  %v2469_v16 = vpop.f32.mrb[28].mxu1 }
 0x132   : > { %v1787_v21 = vpop.f32.mrb[29].mxu0  ;;  %v1855_v25 = vpop.f32.mrb[29].mxu1 }
 0x133   : > { %v2473_v26 = vpop.f32.mrb[30].mxu0  ;;  %v2475_v30 = vpop.f32.mrb[30].mxu1 }
 0x134   : > { %v1788_v35 = vpop.f32.mrb[31].mxu0  ;;  %v1856_v36 = vpop.f32.mrb[31].mxu1 }
 0x139   : > { %v2479_v40 = vpop.f32.mrb[32].mxu0  ;;  %v2481_v41 = vpop.f32.mrb[32].mxu1 }
 0x13a   : > { %v1791_v46 = vpop.f32.mrb[33].mxu0  ;;  %v1859_v50 = vpop.f32.mrb[33].mxu1 }
 0x13b   : > { %v2485_v51 = vpop.f32.mrb[34].mxu0  ;;  %v2487_v55 = vpop.f32.mrb[34].mxu1 }
 0x13c   : > { %v1792_v60 = vpop.f32.mrb[35].mxu0  ;;  %v1860_v0 = vpop.f32.mrb[35].mxu1 }
 0x141   : > { %v2491_v10 = vpop.f32.mrb[36].mxu0  ;;  %v2493_v11 = vpop.f32.mrb[36].mxu1 }
 0x142   : > { %v1795_v25 = vpop.f32.mrb[37].mxu0  ;;  %v1863_v35 = vpop.f32.mrb[37].mxu1 }
 0x143   : > { %v2497_v36 = vpop.f32.mrb[38].mxu0  ;;  %v2499_v46 = vpop.f32.mrb[38].mxu1 }
 0x144   : > { %v1796_v45 = vpop.f32.mrb[39].mxu0  ;;  %v1864_v56 = vpop.f32.mrb[39].mxu1 }
 0x149   : > { %v2503_v60 = vpop.f32.mrb[40].mxu0  ;;  %v2505_v0 = vpop.f32.mrb[40].mxu1 }
 0x14a   : > { %v1799_v20 = vpop.f32.mrb[41].mxu0  ;;  %v1867_v21 = vpop.f32.mrb[41].mxu1 }
 0x14b   : > { %v2509_v25 = vpop.f32.mrb[42].mxu0  ;;  %v2511_v35 = vpop.f32.mrb[42].mxu1 }
 0x14c   : > { %v1800_v59 = vpop.f32.mrb[43].mxu0  ;;  %v1868_v50 = vpop.f32.mrb[43].mxu1 }
 0x151   : > { %v2515_v45 = vpop.f32.mrb[44].mxu0  ;;  %v2517_v56 = vpop.f32.mrb[44].mxu1 }
 0x152   : > { %v1803_v49 = vpop.f32.mrb[45].mxu0  ;;  %v1871_v31 = vpop.f32.mrb[45].mxu1 }
 0x153   : > { %v2521_v20 = vpop.f32.mrb[46].mxu0  ;;  %v2523_v21 = vpop.f32.mrb[46].mxu1 }
 0x154   : > { %v1804_v39 = vpop.f32.mrb[47].mxu0  ;;  %v1872_v6 = vpop.f32.mrb[47].mxu1 }
 0x159   : > { %v2527_v59 = vpop.f32.mrb[48].mxu0  ;;  %v2529_v50 = vpop.f32.mrb[48].mxu1 }
 0x15a   : > { %v1807_v54 = vpop.f32.mrb[49].mxu0  ;;  %v1875_v49 = vpop.f32.mrb[49].mxu1 }
 0x15b   : > { %v620_v31 = vpop.f32.mrb[50].mxu0  ;;  %v857_v29 = vpop.f32.mrb[50].mxu1 }
 0x15c   : > { %v1808_v24 = vpop.f32.mrb[51].mxu0  ;;  %v1876_v19 = vpop.f32.mrb[51].mxu1 }
 0x15d   : > { %v2704_v19 = vmax.f32 %v2389_v3, %v2391_v4  ;;  %v2705_v4 = vmax.f32 %v2395_v7, %v2397_v8 }
 0x161   : > { %v1020_v14 = vpop.f32.mrb[52].mxu0  ;;  %v1282_v9 = vpop.f32.mrb[52].mxu1 }
 0x162   : > { %v1122_v39 = vmax.f32 %v860_v63, %v1020_v14  ;;  %v1895_v6 = vpop.f32.mrb[53].mxu0  ;;  %v1963_v44 = vpop.f32.mrb[53].mxu1 }
 0x163   : > { %v1023_v34 = vpop.f32.mrb[54].mxu0  ;;  %v1285_v54 = vpop.f32.mrb[54].mxu1 }
 0x164   : > { %v1384_v49 = vmax.f32 %v1122_v39, %v1282_v9  ;;  %v1123_v24 = vmax.f32 %v2704_v19, %v1023_v34  ;;  %v1896_v29 = vpop.f32.mrb[55].mxu0  ;;  %v1964_v31 = vpop.f32.mrb[55].mxu1 }
 0x166   : > { %v1416_v61 = vadd.f32 %v2539_v1, %v1384_v49  ;;  %v1385_v62 = vmax.f32 %v1123_v24, %v1285_v54  ;;  %v2706_v24 = vmax.f32 %v2401_v12, %v2403_v13 }
 0x168   : > { %v1441_v63 = vmax.f32 %v1416_v61, 0.0  ;;  %v1417_v9 = vadd.f32 %v2539_v1, %v1385_v62 }
 0x169   : > { %v1028_v14 = vpop.f32.mrb[56].mxu0  ;;  %v1290_v44 = vpop.f32.mrb[56].mxu1 }
 0x16a   : > { %1467 = vst.msk [vmem:[%s2549_s12] sm:$0xff] %vm1466_vm1, %v1441_v63  ;;  %v1442_v3 = vmax.f32 %v1417_v9, 0.0  ;;  %v1124_v34 = vmax.f32 %v2705_v4, %v1028_v14  ;;  %v1899_v39 = vpop.f32.mrb[57].mxu0  ;;  %v1967_v6 = vpop.f32.mrb[57].mxu1 }
 0x16b   : > { %v1031_v54 = vpop.f32.mrb[58].mxu0  ;;  %v1293_v49 = vpop.f32.mrb[58].mxu1 }
 0x16c   : > { %1468 = vst.msk [vmem:[%s2549_s12 + $0x8] sm:$0xff] %vm1466_vm1, %v1442_v3  ;;  %v1386_v19 = vmax.f32 %v1124_v34, %v1290_v44  ;;  %v1125_v29 = vmax.f32 %v2706_v24, %v1031_v54  ;;  %v1900_v31 = vpop.f32.mrb[59].mxu0  ;;  %v1968_v61 = vpop.f32.mrb[59].mxu1  ;;  %v2707_v44 = vmax.f32 %v2407_v17, %v2409_v18  ;;  %v2708_v54 = vmax.f32 %v2413_v22, %v2415_v23 }
 0x16e   : > { %v1418_v62 = vadd.f32 %v2539_v1, %v1386_v19  ;;  %v1387_v63 = vmax.f32 %v1125_v29, %v1293_v49 }
 0x170   : > { %v1443_v7 = vmax.f32 %v1418_v62, 0.0  ;;  %v1419_v8 = vadd.f32 %v2539_v1, %v1387_v63 }
 0x171   : > { %v1036_v9 = vpop.f32.mrb[60].mxu0  ;;  %v1298_v14 = vpop.f32.mrb[60].mxu1 }
 0x172   : > { %1469 = vst.msk [vmem:[%s2549_s12 + $0x10] sm:$0xff] %vm1466_vm1, %v1443_v7  ;;  %v1444_v4 = vmax.f32 %v1419_v8, 0.0  ;;  %v1126_v3 = vmax.f32 %v2707_v44, %v1036_v9  ;;  %v1903_v12 = vpop.f32.mrb[61].mxu0  ;;  %v1971_v13 = vpop.f32.mrb[61].mxu1  ;;  %v2709_v7 = vmax.f32 %v2419_v27, %v2421_v28  ;;  %v2710_v44 = vmax.f32 %v2425_v32, %v2427_v33 }
 0x173   : > { %v1039_v34 = vpop.f32.mrb[62].mxu0  ;;  %v1301_v39 = vpop.f32.mrb[62].mxu1 }
 0x174   : > { %1470 = vst.msk [vmem:[%s2549_s12 + $0x18] sm:$0xff] %vm1466_vm1, %v1444_v4  ;;  %v1388_v6 = vmax.f32 %v1126_v3, %v1298_v14  ;;  %v1127_v49 = vmax.f32 %v2708_v54, %v1039_v34  ;;  %v1904_v19 = vpop.f32.mrb[63].mxu0  ;;  %v1972_v24 = vpop.f32.mrb[63].mxu1 }
 0x175   : > { %v2711_v19 = vmax.f32 %v2431_v37, %v2433_v38 }
 0x176   : > { %v1420_v29 = vadd.f32 %v2539_v1, %v1388_v6  ;;  %v1389_v31 = vmax.f32 %v1127_v49, %v1301_v39 }
 0x178   : > { %v1445_v17 = vmax.f32 %v1420_v29, 0.0  ;;  %v1421_v18 = vadd.f32 %v2539_v1, %v1389_v31 }
 0x179   : > { %v1044_v61 = vpop.f32.mrb[64].mxu0  ;;  %v1306_v62 = vpop.f32.mrb[64].mxu1 }
 0x17a   : > { %1471 = vst.msk [vmem:[%s2549_s12 + $0x20] sm:$0xff] %vm1466_vm1, %v1445_v17  ;;  %v1446_v63 = vmax.f32 %v1421_v18, 0.0  ;;  %v1128_v8 = vmax.f32 %v2709_v7, %v1044_v61  ;;  %v1907_v22 = vpop.f32.mrb[65].mxu0  ;;  %v1975_v23 = vpop.f32.mrb[65].mxu1  ;;  %v2712_v18 = vmax.f32 %v2437_v42, %v2439_v43 }
 0x17b   : > { %v1047_v9 = vpop.f32.mrb[66].mxu0  ;;  %v1309_v14 = vpop.f32.mrb[66].mxu1 }
 0x17c   : > { %1472 = vst.msk [vmem:[%s2549_s12 + $0x28] sm:$0xff] %vm1466_vm1, %v1446_v63  ;;  %v1390_v4 = vmax.f32 %v1128_v8, %v1306_v62  ;;  %v1129_v3 = vmax.f32 %v2710_v44, %v1047_v9  ;;  %v1908_v12 = vpop.f32.mrb[67].mxu0  ;;  %v1976_v13 = vpop.f32.mrb[67].mxu1 }
 0x17d   : > { %v2714_v13 = vmax.f32 %v2449_v52, %v2451_v53 }
 0x17e   : > { %v1422_v34 = vadd.f32 %v2539_v1, %v1390_v4  ;;  %v1391_v39 = vmax.f32 %v1129_v3, %v1309_v14  ;;  %v2713_v14 = vmax.f32 %v2443_v47, %v2445_v48 }
 0x180   : > { %v1447_v27 = vmax.f32 %v1422_v34, 0.0  ;;  %v1423_v28 = vadd.f32 %v2539_v1, %v1391_v39 }
 0x181   : > { %v1052_v6 = vpop.f32.mrb[68].mxu0  ;;  %v1314_v54 = vpop.f32.mrb[68].mxu1 }
 0x182   : > { %1473 = vst.msk [vmem:[%s2549_s12 + $0x30] sm:$0xff] %vm1466_vm1, %v1447_v27  ;;  %v1448_v49 = vmax.f32 %v1423_v28, 0.0  ;;  %v1130_v24 = vmax.f32 %v2711_v19, %v1052_v6  ;;  %v1911_v32 = vpop.f32.mrb[69].mxu0  ;;  %v1979_v33 = vpop.f32.mrb[69].mxu1 }
 0x183   : > { %v1055_v29 = vpop.f32.mrb[70].mxu0  ;;  %v1317_v31 = vpop.f32.mrb[70].mxu1 }
 0x184   : > { %1474 = vst.msk [vmem:[%s2549_s12 + $0x38] sm:$0xff] %vm1466_vm1, %v1448_v49  ;;  %v1392_v17 = vmax.f32 %v1130_v24, %v1314_v54  ;;  %v1131_v61 = vmax.f32 %v2712_v18, %v1055_v29  ;;  %v1912_v62 = vpop.f32.mrb[71].mxu0  ;;  %v1980_v63 = vpop.f32.mrb[71].mxu1  ;;  %v2715_v24 = vmax.f32 %v2455_v57, %v2457_v58 }
 0x186   : > { %v1424_v7 = vadd.f32 %v2539_v1, %v1392_v17  ;;  %v1393_v8 = vmax.f32 %v1131_v61, %v1317_v31  ;;  %v2716_v17 = vmax.f32 %v2461_v2, %v2463_v5 }
 0x188   : > { %v1449_v37 = vmax.f32 %v1424_v7, 0.0  ;;  %v1425_v38 = vadd.f32 %v2539_v1, %v1393_v8 }
 0x189   : > { %v1060_v22 = vpop.f32.mrb[72].mxu0  ;;  %v1322_v23 = vpop.f32.mrb[72].mxu1 }
 0x18a   : > { %1475 = vst.msk [vmem:[%s2549_s12 + $0x40] sm:$0xff] %vm1466_vm1, %v1449_v37  ;;  %v1450_v9 = vmax.f32 %v1425_v38, 0.0  ;;  %v1132_v4 = vmax.f32 %v2713_v14, %v1060_v22  ;;  %v1915_v42 = vpop.f32.mrb[73].mxu0  ;;  %v1983_v43 = vpop.f32.mrb[73].mxu1  ;;  %v2717_v22 = vmax.f32 %v2467_v15, %v2469_v16 }
 0x18b   : > { %v1063_v44 = vpop.f32.mrb[74].mxu0  ;;  %v1325_v3 = vpop.f32.mrb[74].mxu1  ;;  %v2718_v42 = vmax.f32 %v2473_v26, %v2475_v30 }
 0x18c   : > { %1476 = vst.msk [vmem:[%s2549_s12 + $0x48] sm:$0xff] %vm1466_vm1, %v1450_v9  ;;  %v1394_v12 = vmax.f32 %v1132_v4, %v1322_v23  ;;  %v1133_v34 = vmax.f32 %v2714_v13, %v1063_v44  ;;  %v1916_v39 = vpop.f32.mrb[75].mxu0  ;;  %v1984_v27 = vpop.f32.mrb[75].mxu1 }
 0x18e   : > { %v1426_v28 = vadd.f32 %v2539_v1, %v1394_v12  ;;  %v1395_v6 = vmax.f32 %v1133_v34, %v1325_v3 }
 0x190   : > { %v1451_v47 = vmax.f32 %v1426_v28, 0.0  ;;  %v1427_v48 = vadd.f32 %v2539_v1, %v1395_v6  ;;  %v2719_v28 = vmax.f32 %v2479_v40, %v2481_v41 }
 0x191   : > { %v1068_v54 = vpop.f32.mrb[76].mxu0  ;;  %v1330_v49 = vpop.f32.mrb[76].mxu1 }
 0x192   : > { %1477 = vst.msk [vmem:[%s2549_s12 + $0x50] sm:$0xff] %vm1466_vm1, %v1451_v47  ;;  %v1452_v19 = vmax.f32 %v1427_v48, 0.0  ;;  %v1134_v32 = vmax.f32 %v2715_v24, %v1068_v54  ;;  %v1919_v52 = vpop.f32.mrb[77].mxu0  ;;  %v1987_v53 = vpop.f32.mrb[77].mxu1 }
 0x193   : > { %v1071_v33 = vpop.f32.mrb[78].mxu0  ;;  %v1333_v29 = vpop.f32.mrb[78].mxu1 }
 0x194   : > { %1478 = vst.msk [vmem:[%s2549_s12 + $0x58] sm:$0xff] %vm1466_vm1, %v1452_v19  ;;  %v1396_v31 = vmax.f32 %v1134_v32, %v1330_v49  ;;  %v1135_v18 = vmax.f32 %v2716_v17, %v1071_v33  ;;  %v1920_v61 = vpop.f32.mrb[79].mxu0  ;;  %v1988_v62 = vpop.f32.mrb[79].mxu1  ;;  %v2720_v49 = vmax.f32 %v2485_v51, %v2487_v55  ;;  %v2721_v17 = vmax.f32 %v2491_v10, %v2493_v11 }
 0x196   : > { %v1428_v63 = vadd.f32 %v2539_v1, %v1396_v31  ;;  %v1397_v7 = vmax.f32 %v1135_v18, %v1333_v29 }
 0x198   : > { %v1453_v57 = vmax.f32 %v1428_v63, 0.0  ;;  %v1429_v58 = vadd.f32 %v2539_v1, %v1397_v7  ;;  %v2722_v7 = vmax.f32 %v2497_v36, %v2499_v46 }
 0x199   : > { %v1076_v8 = vpop.f32.mrb[80].mxu0  ;;  %v1338_v37 = vpop.f32.mrb[80].mxu1 }
 0x19a   : > { %1479 = vst.msk [vmem:[%s2549_s12 + $0x60] sm:$0xff] %vm1466_vm1, %v1453_v57  ;;  %v1454_v38 = vmax.f32 %v1429_v58, 0.0  ;;  %v1136_v23 = vmax.f32 %v2717_v22, %v1076_v8  ;;  %v1923_v2 = vpop.f32.mrb[81].mxu0  ;;  %v1991_v5 = vpop.f32.mrb[81].mxu1 }
 0x19b   : > { %v1079_v9 = vpop.f32.mrb[82].mxu0  ;;  %v1341_v14 = vpop.f32.mrb[82].mxu1  ;;  %v2723_v5 = vmax.f32 %v2503_v60, %v2505_v0 }
 0x19c   : > { %1480 = vst.msk [vmem:[%s2549_s12 + $0x68] sm:$0xff] %vm1466_vm1, %v1454_v38  ;;  %v1398_v4 = vmax.f32 %v1136_v23, %v1338_v37  ;;  %v1137_v43 = vmax.f32 %v2718_v42, %v1079_v9  ;;  %v1924_v44 = vpop.f32.mrb[83].mxu0  ;;  %v1992_v3 = vpop.f32.mrb[83].mxu1 }
 0x19e   : > { %v1430_v12 = vadd.f32 %v2539_v1, %v1398_v4  ;;  %v1399_v13 = vmax.f32 %v1137_v43, %v1341_v14  ;;  %v2724_v43 = vmax.f32 %v2509_v25, %v2511_v35 }
 0x1a0   : > { %v1455_v15 = vmax.f32 %v1430_v12, 0.0  ;;  %v1431_v16 = vadd.f32 %v2539_v1, %v1399_v13 }
 0x1a1   : > { %v1084_v34 = vpop.f32.mrb[84].mxu0  ;;  %v1346_v39 = vpop.f32.mrb[84].mxu1 }
 0x1a2   : > { %1481 = vst.msk [vmem:[%s2549_s12 + $0x70] sm:$0xff] %vm1466_vm1, %v1455_v15  ;;  %v1456_v27 = vmax.f32 %v1431_v16, 0.0  ;;  %v1138_v6 = vmax.f32 %v2719_v28, %v1084_v34  ;;  %v1927_v26 = vpop.f32.mrb[85].mxu0  ;;  %v1995_v30 = vpop.f32.mrb[85].mxu1 }
 0x1a3   : > { %v1087_v47 = vpop.f32.mrb[86].mxu0  ;;  %v1349_v48 = vpop.f32.mrb[86].mxu1 }
 0x1a4   : > { %1482 = vst.msk [vmem:[%s2549_s12 + $0x78] sm:$0xff] %vm1466_vm1, %v1456_v27  ;;  %v1400_v54 = vmax.f32 %v1138_v6, %v1346_v39  ;;  %v1139_v19 = vmax.f32 %v2720_v49, %v1087_v47  ;;  %v1928_v24 = vpop.f32.mrb[87].mxu0  ;;  %v1996_v32 = vpop.f32.mrb[87].mxu1  ;;  %v2725_v27 = vmax.f32 %v2515_v45, %v2517_v56  ;;  %v2726_v47 = vmax.f32 %v2521_v20, %v2523_v21 }
 0x1a6   : > { %v1432_v52 = vadd.f32 %v2539_v1, %v1400_v54  ;;  %v1401_v53 = vmax.f32 %v1139_v19, %v1349_v48 }
 0x1a8   : > { %v1457_v40 = vmax.f32 %v1432_v52, 0.0  ;;  %v1433_v41 = vadd.f32 %v2539_v1, %v1401_v53 }
 0x1a9   : > { %v1092_v33 = vpop.f32.mrb[88].mxu0  ;;  %v1354_v29 = vpop.f32.mrb[88].mxu1 }
 0x1aa   : > { %1483 = vst.msk [vmem:[%s2549_s12 + $0x80] sm:$0xff] %vm1466_vm1, %v1457_v40  ;;  %v1458_v31 = vmax.f32 %v1433_v41, 0.0  ;;  %v1140_v18 = vmax.f32 %v2721_v17, %v1092_v33  ;;  %v1931_v51 = vpop.f32.mrb[89].mxu0  ;;  %v1999_v55 = vpop.f32.mrb[89].mxu1  ;;  %v2727_v40 = vmax.f32 %v2527_v59, %v2529_v50 }
 0x1ab   : > { %v1095_v61 = vpop.f32.mrb[90].mxu0  ;;  %v1357_v62 = vpop.f32.mrb[90].mxu1 }
 0x1ac   : > { %1484 = vst.msk [vmem:[%s2549_s12 + $0x88] sm:$0xff] %vm1466_vm1, %v1458_v31  ;;  %v1402_v63 = vmax.f32 %v1140_v18, %v1354_v29  ;;  %v1141_v57 = vmax.f32 %v2722_v7, %v1095_v61  ;;  %v1932_v58 = vpop.f32.mrb[91].mxu0  ;;  %v2000_v8 = vpop.f32.mrb[91].mxu1 }
 0x1ae   : > { %v1434_v37 = vadd.f32 %v2539_v1, %v1402_v63  ;;  %v1403_v38 = vmax.f32 %v1141_v57, %v1357_v62 }
 0x1b0   : > { %v1459_v10 = vmax.f32 %v1434_v37, 0.0  ;;  %v1435_v11 = vadd.f32 %v2539_v1, %v1403_v38 }
 0x1b1   : > { %v1100_v22 = vpop.f32.mrb[92].mxu0  ;;  %v1362_v23 = vpop.f32.mrb[92].mxu1 }
 0x1b2   : > { %1485 = vst.msk [vmem:[%s2549_s12 + $0x90] sm:$0xff] %vm1466_vm1, %v1459_v10  ;;  %v1460_v2 = vmax.f32 %v1435_v11, 0.0  ;;  %v1142_v9 = vmax.f32 %v2723_v5, %v1100_v22  ;;  %v1935_v36 = vpop.f32.mrb[93].mxu0  ;;  %v2003_v46 = vpop.f32.mrb[93].mxu1 }
 0x1b3   : > { %v1103_v14 = vpop.f32.mrb[94].mxu0  ;;  %v1365_v4 = vpop.f32.mrb[94].mxu1 }
 0x1b4   : > { %1486 = vst.msk [vmem:[%s2549_s12 + $0x98] sm:$0xff] %vm1466_vm1, %v1460_v2  ;;  %v1404_v42 = vmax.f32 %v1142_v9, %v1362_v23  ;;  %v1143_v44 = vmax.f32 %v2724_v43, %v1103_v14  ;;  %v1936_v3 = vpop.f32.mrb[95].mxu0  ;;  %v2004_v12 = vpop.f32.mrb[95].mxu1 }
 0x1b6   : > { %v1436_v13 = vadd.f32 %v2539_v1, %v1404_v42  ;;  %v1405_v15 = vmax.f32 %v1143_v44, %v1365_v4 }
 0x1b8   : > { %v1461_v60 = vmax.f32 %v1436_v13, 0.0  ;;  %v1437_v0 = vadd.f32 %v2539_v1, %v1405_v15 }
 0x1b9   : > { %v1108_v16 = vpop.f32.mrb[96].mxu0  ;;  %v1370_v34 = vpop.f32.mrb[96].mxu1 }
 0x1ba   : > { %1487 = vst.msk [vmem:[%s2549_s12 + $0xa0] sm:$0xff] %vm1466_vm1, %v1461_v60  ;;  %v1462_v39 = vmax.f32 %v1437_v0, 0.0  ;;  %v1144_v28 = vmax.f32 %v2725_v27, %v1108_v16  ;;  %v1939_v25 = vpop.f32.mrb[97].mxu0  ;;  %v2007_v35 = vpop.f32.mrb[97].mxu1 }
 0x1bb   : > { %v1111_v6 = vpop.f32.mrb[98].mxu0  ;;  %v1373_v26 = vpop.f32.mrb[98].mxu1 }
 0x1bc   : > { %1488 = vst.msk [vmem:[%s2549_s12 + $0xa8] sm:$0xff] %vm1466_vm1, %v1462_v39  ;;  %v1406_v30 = vmax.f32 %v1144_v28, %v1370_v34  ;;  %v1145_v48 = vmax.f32 %v2726_v47, %v1111_v6  ;;  %v1940_v54 = vpop.f32.mrb[99].mxu0  ;;  %v2008_v49 = vpop.f32.mrb[99].mxu1 }
 0x1be   : > { %v1438_v19 = vadd.f32 %v2539_v1, %v1406_v30  ;;  %v1407_v24 = vmax.f32 %v1145_v48, %v1373_v26 }
 0x1c0   : > { %v1463_v45 = vmax.f32 %v1438_v19, 0.0  ;;  %v1439_v56 = vadd.f32 %v2539_v1, %v1407_v24 }
 0x1c1   : > { %v1116_v32 = vpop.f32.mrb[100].mxu0  ;;  %v1378_v52 = vpop.f32.mrb[100].mxu1 }
 0x1c2   : > { %1489 = vst.msk [vmem:[%s2549_s12 + $0xb0] sm:$0xff] %vm1466_vm1, %v1463_v45  ;;  %v1464_v53 = vmax.f32 %v1439_v56, 0.0  ;;  %v1146_v20 = vmax.f32 %v2727_v40, %v1116_v32  ;;  %v1943_v21 = vpop.f32.mrb[101].mxu0  ;;  %v2011_v41 = vpop.f32.mrb[101].mxu1 }
 0x1c3   : > { %v1119_v33 = vpop.f32.mrb[102].mxu0  ;;  %v1381_v29 = vpop.f32.mrb[102].mxu1 }
 0x1c4   : > { %1490 = vst.msk [vmem:[%s2549_s12 + $0xb8] sm:$0xff] %vm1466_vm1, %v1464_v53  ;;  %v1408_v31 = vmax.f32 %v1146_v20, %v1378_v52  ;;  %v1944_v17 = vpop.f32.mrb[103].mxu0  ;;  %v2012_v18 = vpop.f32.mrb[103].mxu1 }
 0x1c6   : > { %v1440_v51 = vadd.f32 %v2539_v1, %v1408_v31 }
 0x1c8   : > { %v1465_v55 = vmax.f32 %v1440_v51, 0.0 }
 0x1ca   : > { %1491 = vst.msk [vmem:[%s2549_s12 + $0xc0] sm:$0xff] %vm1466_vm1, %v1465_v55 }
 0x1cb PF: > { %s16_s21 = sadd.s32 1, %s2089_s21  }
 0x1cc   : > { %p13_p4 = scmp.ge.s32.totalorder %s16_s21, 4  }
 0x1ce   :  { %15 = sbr.rel (!%p13_p4) target bundleno = 1 (0x1), region = 83 }

// kernel: cnn_net_forward.4
= control target key start
LH: loop header
LB: loop body
LE: loop exit
PB: predicated region body
PF: predicated region fallthrough
CT: control target
= control target key end

     0   :  { %s1139_s21 = smov 0   ;;  %s1305_s0 = inlined_call_operand.vmem [shape: bf16[64,256], index: 0, kind: input, shape index: {}]   ;;  %s1306_s1 = inlined_call_operand.vmem [shape: bf16[64,256], index: 1, kind: input, shape index: {}]   ;;  %s1307_s2 = inlined_call_operand.vmem [shape: bf16[64,256], index: 2, kind: input, shape index: {}]   ;;  %s1308_s3 = inlined_call_operand.vmem [shape: bf16[64,256], index: 3, kind: input, shape index: {}]   ;;  %s1309_s4 = inlined_call_operand.vmem [shape: bf16[256,16], index: 4, kind: input, shape index: {}]   ;;  %s1310_s5 = inlined_call_operand.vmem [shape: f32[1,16], index: 5, kind: input, shape index: {}]   ;;  %s1311_s6 = inlined_call_operand.vmem [shape: f32[64,16], index: 6, kind: output, shape index: {}]  }
   0x1 LB: > { %s878_s22 = sadd.s32 4294967295, %s1102_s21   ;;  %p882_p0 = scmp.ge.s32.totalorder %s1102_s21, 1  ;;  %s1102_s21 = sphi %s1139_s21, %s16_s21  }
   0x2   : > { %p250_p1 = scmp.lt.s32.totalorder %s1102_s21, 3 }
   0x4   : > { %p251_p2 = pnand %p882_p0, %p250_p1 }
   0x5   : > { %v1056_v0 = vld [vmem:[%s1309_s4 + $0x40] sm:$0xff] (!%p251_p2)   ;;  %s883_s25 = sshll.u32 (!%p251_p2), %s878_s22, 2  ;;  %v1158_v2 = vld [vmem:[%s1309_s4 + $0x48] sm:$0xff] (!%p251_p2)   ;;  %v1172_v4 = vld [vmem:[%s1309_s4 + $0x50] sm:$0xff] (!%p251_p2)   ;;  %vm781_vm0 = vcmask (!%p251_p2), 130048  }
   0x6   : > { %254 = sbr.rel (%p251_p2) target bundleno = 304 (0x130), region = 44  ;;  %v1153_v1 = vld [vmem:[%s1309_s4] sm:$0xff] (!%p251_p2)   ;;  %936 = vmatprep.subr.bf16.mxu0 (!%p251_p2), %v1056_v0  ;;  %964 = vmatprep.subr.bf16.mxu1 (!%p251_p2), %v1056_v0  ;;  %v1165_v3 = vld [vmem:[%s1309_s4 + $0x8] sm:$0xff] (!%p251_p2)   ;;  %p300_p3 = scmp.lt.s32.totalorder (!%p251_p2), %s883_s25, 7  ;;  %v1179_v5 = vld [vmem:[%s1309_s4 + $0x10] sm:$0xff] (!%p251_p2)  }
   0x7   : > { %937 = vmatpush3.bf16.msra.mxu0 (!%p251_p2), %v1153_v1  ;;  %965 = vmatpush3.bf16.msra.mxu1 (!%p251_p2), %v1153_v1  ;;  %v1186_v6 = vld [vmem:[%s1309_s4 + $0x58] sm:$0xff] (!%p251_p2)   ;;  %v1202_v8 = vld [vmem:[%s1309_s4 + $0x60] sm:$0xff] (!%p251_p2)   ;;  %v1066_v10 = vld [vmem:[%s1309_s4 + $0x68] sm:$0xff] (!%p251_p2)  }
   0x8   : > { %938 = vmatprep.subr.bf16.mxu0 (!%p251_p2), %v1158_v2  ;;  %966 = vmatprep.subr.bf16.mxu1 (!%p251_p2), %v1158_v2  ;;  %v1193_v7 = vld [vmem:[%s1309_s4 + $0x18] sm:$0xff] (!%p251_p2)   ;;  %v1215_v9 = vld [vmem:[%s1309_s4 + $0x20] sm:$0xff] (!%p251_p2)   ;;  %v1067_v13 = vld [vmem:[%s1309_s4 + $0x28] sm:$0xff] (!%p251_p2)  }
   0x9   : > { %v1068_v14 = vld [vmem:[%s1309_s4 + $0x70] sm:$0xff] (!%p251_p2)   ;;  %v1070_v16 = vld [vmem:[%s1309_s4 + $0x78] sm:$0xff] (!%p251_p2)  }
   0xa   : > { %v1069_v15 = vld [vmem:[%s1309_s4 + $0x30] sm:$0xff] (!%p251_p2)   ;;  %v1071_v17 = vld [vmem:[%s1309_s4 + $0x38] sm:$0xff] (!%p251_p2)  }
   0xb   : > { %939 = vmatpush3.bf16.msra.mxu0 (!%p251_p2), %v1165_v3  ;;  %967 = vmatpush3.bf16.msra.mxu1 (!%p251_p2), %v1165_v3 }
   0xc   : > { %940 = vmatprep.subr.bf16.mxu0 (!%p251_p2), %v1172_v4  ;;  %968 = vmatprep.subr.bf16.mxu1 (!%p251_p2), %v1172_v4 }
   0xd   : > { %s1313_s25 = smov (!%p300_p3, %s883_s25), 7 }
   0xe   : > { %s1195_s16 = sshll.u32 %s1313_s25, 3 }
   0xf   : > { %941 = vmatpush3.bf16.msra.mxu0 %v1179_v5  ;;  %969 = vmatpush3.bf16.msra.mxu1 %v1179_v5  ;;  %s1208_s22 = scalar_lea.vmem %s1305_s0, %s1195_s16  ;;  %s1221_s27 = scalar_lea.vmem %s1306_s1, %s1195_s16 }
  0x10   : > { %942 = vmatprep.subr.bf16.mxu0 %v1186_v6  ;;  %970 = vmatprep.subr.bf16.mxu1 %v1186_v6  ;;  %v1074_v11 = vld [vmem:[%s1208_s22 + $0x4] ss:$8 sps:$4 sm:$0xff]   ;;  %s1242_s12 = scalar_lea.vmem %s1307_s2, %s1195_s16  ;;  %s1248_s15 = scalar_lea.vmem %s1308_s3, %s1195_s16  ;;  %v1072_v18 = vld [vmem:[%s1208_s22] ss:$8 sps:$4 sm:$0xff]   ;;  %v1078_v20 = vld [vmem:[%s1208_s22 + $0x14] ss:$8 sps:$4 sm:$0xff]  }
  0x11   : > { %v1077_v12 = vld [vmem:[%s1221_s27 + $0x4] ss:$8 sps:$4 sm:$0xff]   ;;  %518 = vmatprep.mubr.bf16.mxu0 %v1074_v11  ;;  %v1075_v19 = vld [vmem:[%s1221_s27] ss:$8 sps:$4 sm:$0xff]   ;;  %v1080_v21 = vld [vmem:[%s1221_s27 + $0x14] ss:$8 sps:$4 sm:$0xff]   ;;  %s331_s28 = scalar_lea.vmem %s1311_s6, %s1195_s16 }
  0x12   : > { %591 = vmatprep.mubr.bf16.mxu1 %v1077_v12  ;;  %v1082_v22 = vld [vmem:[%s1208_s22 + $0x10] ss:$8 sps:$4 sm:$0xff]   ;;  %v1086_v24 = vld [vmem:[%s1242_s12 + $0x4] ss:$8 sps:$4 sm:$0xff]   ;;  %v1084_v26 = vld [vmem:[%s1242_s12] ss:$8 sps:$4 sm:$0xff]  }
  0x13   : > { %943 = vmatpush3.bf16.msra.mxu0 %v1193_v7  ;;  %971 = vmatpush3.bf16.msra.mxu1 %v1193_v7  ;;  %v1083_v23 = vld [vmem:[%s1221_s27 + $0x10] ss:$8 sps:$4 sm:$0xff]   ;;  %v1089_v25 = vld [vmem:[%s1248_s15 + $0x4] ss:$8 sps:$4 sm:$0xff]   ;;  %v1087_v27 = vld [vmem:[%s1248_s15] ss:$8 sps:$4 sm:$0xff]  }
  0x14   : > { %944 = vmatprep.subr.bf16.mxu0 %v1202_v8  ;;  %972 = vmatprep.subr.bf16.mxu1 %v1202_v8  ;;  %v1090_v28 = vld [vmem:[%s1242_s12 + $0x14] ss:$8 sps:$4 sm:$0xff]   ;;  %v1094_v30 = vld [vmem:[%s1242_s12 + $0x10] ss:$8 sps:$4 sm:$0xff]  }
  0x15   : > { %v1092_v29 = vld [vmem:[%s1248_s15 + $0x14] ss:$8 sps:$4 sm:$0xff]   ;;  %v1095_v31 = vld [vmem:[%s1248_s15 + $0x10] ss:$8 sps:$4 sm:$0xff]  }
  0x17   : > { %945 = vmatpush3.bf16.msra.mxu0 %v1215_v9  ;;  %973 = vmatpush3.bf16.msra.mxu1 %v1215_v9 }
  0x18   : > { %946 = vmatprep.subr.bf16.mxu0 %v1066_v10  ;;  %974 = vmatprep.subr.bf16.mxu1 %v1066_v10 }
  0x1b   : > { %947 = vmatpush3.bf16.msra.mxu0 %v1067_v13  ;;  %975 = vmatpush3.bf16.msra.mxu1 %v1067_v13 }
  0x1c   : > { %948 = vmatprep.subr.bf16.mxu0 %v1068_v14  ;;  %976 = vmatprep.subr.bf16.mxu1 %v1068_v14 }
  0x1f   : > { %949 = vmatpush3.bf16.msra.mxu0 %v1069_v15  ;;  %977 = vmatpush3.bf16.msra.mxu1 %v1069_v15 }
  0x20   : > { %950 = vmatprep.subr.bf16.mxu0 %v1070_v16  ;;  %978 = vmatprep.subr.bf16.mxu1 %v1070_v16 }
  0x23   : > { %951 = vmatpush3.bf16.msra.mxu0 %v1071_v17  ;;  %979 = vmatpush3.bf16.msra.mxu1 %v1071_v17 }
  0x24   : > { %992 = vmatprep.subr.bf16.mxu0 %v1056_v0  ;;  %1020 = vmatprep.subr.bf16.mxu1 %v1056_v0 }
  0x26   : > { %519 = vmatmul.mubr.bf16.vlgmr.msra.gmra.mrb[0].mxu0 %v1072_v18  ;;  %592 = vmatmul.mubr.bf16.vlgmr.msra.gmra.mrb[0].mxu1 %v1075_v19 }
  0x27   : > { %993 = vmatpush3.bf16.msra.mxu0 %v1153_v1  ;;  %1021 = vmatpush3.bf16.msra.mxu1 %v1153_v1 }
  0x28   : > { %994 = vmatprep.subr.bf16.mxu0 %v1158_v2  ;;  %1022 = vmatprep.subr.bf16.mxu1 %v1158_v2 }
  0x29   : > { %526 = vmatprep.mubr.bf16.mxu0 %v1078_v20  ;;  %599 = vmatprep.mubr.bf16.mxu1 %v1080_v21 }
  0x2b   : > { %995 = vmatpush3.bf16.msra.mxu0 %v1165_v3  ;;  %1023 = vmatpush3.bf16.msra.mxu1 %v1165_v3 }
  0x2c   : > { %996 = vmatprep.subr.bf16.mxu0 %v1172_v4  ;;  %1024 = vmatprep.subr.bf16.mxu1 %v1172_v4 }
  0x2e   : > { %527 = vmatmul.mubr.bf16.gmra.mrb[4].mxu0 %v1082_v22  ;;  %600 = vmatmul.mubr.bf16.gmra.mrb[4].mxu1 %v1083_v23 }
  0x2f   : > { %997 = vmatpush3.bf16.msra.mxu0 %v1179_v5  ;;  %1025 = vmatpush3.bf16.msra.mxu1 %v1179_v5 }
  0x30   : > { %998 = vmatprep.subr.bf16.mxu0 %v1186_v6  ;;  %1026 = vmatprep.subr.bf16.mxu1 %v1186_v6 }
  0x31   : > { %668 = vmatprep.mubr.bf16.mxu0 %v1086_v24  ;;  %745 = vmatprep.mubr.bf16.mxu1 %v1089_v25 }
  0x33   : > { %999 = vmatpush3.bf16.msra.mxu0 %v1193_v7  ;;  %1027 = vmatpush3.bf16.msra.mxu1 %v1193_v7 }
  0x34   : > { %1000 = vmatprep.subr.bf16.mxu0 %v1202_v8  ;;  %1028 = vmatprep.subr.bf16.mxu1 %v1202_v8 }
  0x37   : > { %1001 = vmatpush3.bf16.msra.mxu0 %v1215_v9  ;;  %1029 = vmatpush3.bf16.msra.mxu1 %v1215_v9  ;;  %v929_v9 = vld [vmem:[%s1310_s5] ss:$0 sm:$0xff] }
  0x38   : > { %1002 = vmatprep.subr.bf16.mxu0 %v1066_v10  ;;  %1030 = vmatprep.subr.bf16.mxu1 %v1066_v10 }
  0x3b   : > { %1003 = vmatpush3.bf16.msra.mxu0 %v1067_v13  ;;  %1031 = vmatpush3.bf16.msra.mxu1 %v1067_v13 }
  0x3c   : > { %1004 = vmatprep.subr.bf16.mxu0 %v1068_v14  ;;  %1032 = vmatprep.subr.bf16.mxu1 %v1068_v14 }
  0x3f   : > { %1005 = vmatpush3.bf16.msra.mxu0 %v1069_v15  ;;  %1033 = vmatpush3.bf16.msra.mxu1 %v1069_v15 }
  0x40   : > { %1006 = vmatprep.subr.bf16.mxu0 %v1070_v16  ;;  %1034 = vmatprep.subr.bf16.mxu1 %v1070_v16 }
  0x43   : > { %1007 = vmatpush3.bf16.msra.mxu0 %v1071_v17  ;;  %1035 = vmatpush3.bf16.msra.mxu1 %v1071_v17 }
  0x46   : > { %669 = vmatmul.mubr.bf16.vlgmr.msra.gmra.mrb[8].mxu0 %v1084_v26  ;;  %746 = vmatmul.mubr.bf16.vlgmr.msra.gmra.mrb[8].mxu1 %v1087_v27 }
  0x47   : > { %676 = vmatprep.mubr.bf16.mxu0 %v1090_v28  ;;  %753 = vmatprep.mubr.bf16.mxu1 %v1092_v29 }
  0x4e   : > { %677 = vmatmul.mubr.bf16.gmra.mrb[12].mxu0 %v1094_v30  ;;  %754 = vmatmul.mubr.bf16.gmra.mrb[12].mxu1 %v1095_v31 }
  0xf9   : > { %v952_v32 = vpop.f32.mrb[0].mxu0  ;;  %v980_v33 = vpop.f32.mrb[0].mxu1 }
  0xfa   : > { %v953_v34 = vpop.f32.mrb[1].mxu0  ;;  %v981_v35 = vpop.f32.mrb[1].mxu1 }
  0xfb   : > { %v954_v36 = vadd.f32 %v953_v34, %v952_v32  ;;  %v982_v37 = vadd.f32 %v981_v35, %v980_v33  ;;  %v955_v38 = vpop.f32.mrb[2].mxu0  ;;  %v983_v39 = vpop.f32.mrb[2].mxu1 }
  0xfc   : > { %v956_v40 = vpop.f32.mrb[3].mxu0  ;;  %v984_v41 = vpop.f32.mrb[3].mxu1 }
  0xfd   : > { %v608_v42 = vmax.f32 %v954_v36, %v982_v37  ;;  %v957_v43 = vadd.f32 %v956_v40, %v955_v38  ;;  %v985_v44 = vadd.f32 %v984_v41, %v983_v39 }
  0xff   : > { %v609_v45 = vmax.f32 %v957_v43, %v985_v44 }
 0x101   : > { %v958_v46 = vpop.f32.mrb[4].mxu0  ;;  %v986_v47 = vpop.f32.mrb[4].mxu1 }
 0x102   : > { %v959_v48 = vpop.f32.mrb[5].mxu0  ;;  %v987_v49 = vpop.f32.mrb[5].mxu1 }
 0x103   : > { %v960_v50 = vadd.f32 %v959_v48, %v958_v46  ;;  %v988_v51 = vadd.f32 %v987_v49, %v986_v47  ;;  %v961_v52 = vpop.f32.mrb[6].mxu0  ;;  %v989_v53 = vpop.f32.mrb[6].mxu1 }
 0x104   : > { %v962_v54 = vpop.f32.mrb[7].mxu0  ;;  %v990_v55 = vpop.f32.mrb[7].mxu1 }
 0x105   : > { %v610_v56 = vmax.f32 %v960_v50, %v988_v51  ;;  %v963_v57 = vadd.f32 %v962_v54, %v961_v52  ;;  %v991_v58 = vadd.f32 %v990_v55, %v989_v53 }
 0x107   : > { %v611_v59 = vmax.f32 %v963_v57, %v991_v58 }
 0x119   : > { %v1008_v60 = vpop.f32.mrb[8].mxu0  ;;  %v1036_v61 = vpop.f32.mrb[8].mxu1 }
 0x11a   : > { %v1009_v62 = vpop.f32.mrb[9].mxu0  ;;  %v1037_v63 = vpop.f32.mrb[9].mxu1 }
 0x11b   : > { %v1010_v0 = vadd.f32 %v1009_v62, %v1008_v60  ;;  %v1038_v1 = vadd.f32 %v1037_v63, %v1036_v61  ;;  %v1011_v2 = vpop.f32.mrb[10].mxu0  ;;  %v1039_v3 = vpop.f32.mrb[10].mxu1 }
 0x11c   : > { %v1012_v4 = vpop.f32.mrb[11].mxu0  ;;  %v1040_v5 = vpop.f32.mrb[11].mxu1 }
 0x11d   : > { %v685_v6 = vmax.f32 %v608_v42, %v1010_v0  ;;  %v1013_v7 = vadd.f32 %v1012_v4, %v1011_v2  ;;  %v1041_v8 = vadd.f32 %v1040_v5, %v1039_v3 }
 0x11f   : > { %v762_v10 = vmax.f32 %v685_v6, %v1038_v1  ;;  %v686_v11 = vmax.f32 %v609_v45, %v1013_v7 }
 0x121   : > { %v773_v12 = vadd.f32 %v929_v9, %v762_v10  ;;  %v763_v13 = vmax.f32 %v686_v11, %v1041_v8  ;;  %v1014_v14 = vpop.f32.mrb[12].mxu0  ;;  %v1042_v15 = vpop.f32.mrb[12].mxu1 }
 0x122   : > { %v1015_v16 = vpop.f32.mrb[13].mxu0  ;;  %v1043_v17 = vpop.f32.mrb[13].mxu1 }
 0x123   : > { %v777_v18 = vmax.f32 %v773_v12, 0.0  ;;  %v774_v19 = vadd.f32 %v929_v9, %v763_v13  ;;  %v1016_v20 = vadd.f32 %v1015_v16, %v1014_v14  ;;  %v1044_v21 = vadd.f32 %v1043_v17, %v1042_v15  ;;  %v1017_v22 = vpop.f32.mrb[14].mxu0  ;;  %v1045_v23 = vpop.f32.mrb[14].mxu1 }
 0x124   : > { %v1018_v24 = vpop.f32.mrb[15].mxu0  ;;  %v1046_v25 = vpop.f32.mrb[15].mxu1 }
 0x125   : > { %782 = vst.msk [vmem:[%s331_s28] sm:$0xff] %vm781_vm0, %v777_v18  ;;  %v778_v26 = vmax.f32 %v774_v19, 0.0  ;;  %v687_v27 = vmax.f32 %v610_v56, %v1016_v20  ;;  %v1019_v28 = vadd.f32 %v1018_v24, %v1017_v22  ;;  %v1047_v29 = vadd.f32 %v1046_v25, %v1045_v23 }
 0x127   : > { %783 = vst.msk [vmem:[%s331_s28 + $0x8] sm:$0xff] %vm781_vm0, %v778_v26  ;;  %v764_v30 = vmax.f32 %v687_v27, %v1044_v21  ;;  %v688_v31 = vmax.f32 %v611_v59, %v1019_v28 }
 0x129   : > { %v775_v32 = vadd.f32 %v929_v9, %v764_v30  ;;  %v765_v33 = vmax.f32 %v688_v31, %v1047_v29 }
 0x12b   : > { %v779_v34 = vmax.f32 %v775_v32, 0.0  ;;  %v776_v35 = vadd.f32 %v929_v9, %v765_v33 }
 0x12d   : > { %784 = vst.msk [vmem:[%s331_s28 + $0x10] sm:$0xff] %vm781_vm0, %v779_v34  ;;  %v780_v36 = vmax.f32 %v776_v35, 0.0 }
 0x12f   : > { %785 = vst.msk [vmem:[%s331_s28 + $0x18] sm:$0xff] %vm781_vm0, %v780_v36 }
 0x130 PF: > { %s16_s21 = sadd.s32 1, %s1102_s21  }
 0x131   : > { %p13_p4 = scmp.ge.s32.totalorder %s16_s21, 4  }
 0x133   :  { %15 = sbr.rel (!%p13_p4) target bundleno = 1 (0x1), region = 83 }

// kernel: cnn_net_forward.5
= control target key start
LH: loop header
LB: loop body
LE: loop exit
PB: predicated region body
PF: predicated region fallthrough
CT: control target
= control target key end

     0   :  { %v829_v39 = vmov 0.0   ;;  %vm830_vm0 = vmmov 0   ;;  %vm612_vm1 = vcmask 80896   ;;  %s1051_s1 = inlined_call_operand.vmem [shape: bf16[512,128], index: 1, kind: input, shape index: {}]   ;;  %s1052_s0 = inlined_call_operand.vmem [shape: bf16[8,512], index: 0, kind: input, shape index: {}]   ;;  %s1053_s3 = inlined_call_operand.vmem [shape: bf16[128,128], index: 3, kind: input, shape index: {}]   ;;  %s1054_s5 = inlined_call_operand.vmem [shape: bf16[128,10], index: 5, kind: input, shape index: {}]   ;;  %s1055_s2 = inlined_call_operand.vmem [shape: f32[1,128], index: 2, kind: input, shape index: {}]   ;;  %s1056_s4 = inlined_call_operand.vmem [shape: f32[1,128], index: 4, kind: input, shape index: {}]   ;;  %s1057_s6 = inlined_call_operand.vmem [shape: f32[1,10], index: 6, kind: input, shape index: {}]   ;;  %s1058_s7 = inlined_call_operand.vmem [shape: f32[8,10], index: 7, kind: output, shape index: {}]  }
   0x1   :  { %v777_v0 = vld [vmem:[%s1051_s1 + $0x40] sm:$0xff]   ;;  %v781_v4 = vld [vmem:[%s1051_s1 + $0x48] sm:$0xff]   ;;  %v785_v8 = vld [vmem:[%s1051_s1 + $0x50] sm:$0xff]  }
   0x2   :  { %v778_v1 = vld [vmem:[%s1051_s1 + $0xc0] sm:$0xff]   ;;  %673 = vmatprep.subr.bf16.mxu0 %v777_v0  ;;  %v782_v5 = vld [vmem:[%s1051_s1 + $0xc8] sm:$0xff]   ;;  %v786_v9 = vld [vmem:[%s1051_s1 + $0xd0] sm:$0xff]  }
   0x3   :  { %v779_v2 = vld [vmem:[%s1051_s1] sm:$0xff]   ;;  %695 = vmatprep.subr.bf16.mxu1 %v778_v1  ;;  %v783_v6 = vld [vmem:[%s1051_s1 + $0x8] sm:$0xff]   ;;  %v787_v10 = vld [vmem:[%s1051_s1 + $0x10] sm:$0xff]  }
   0x4   :  { %v780_v3 = vld [vmem:[%s1051_s1 + $0x80] sm:$0xff]   ;;  %674 = vmatpush3.bf16.msra.mxu0 %v779_v2  ;;  %v784_v7 = vld [vmem:[%s1051_s1 + $0x88] sm:$0xff]   ;;  %v788_v11 = vld [vmem:[%s1051_s1 + $0x90] sm:$0xff]  }
   0x5   :  { %696 = vmatpush3.bf16.msra.mxu1 %v780_v3  ;;  %675 = vmatprep.subr.bf16.mxu0 %v781_v4  ;;  %v789_v12 = vld [vmem:[%s1051_s1 + $0x58] sm:$0xff]   ;;  %v793_v16 = vld [vmem:[%s1051_s1 + $0x60] sm:$0xff]   ;;  %v797_v20 = vld [vmem:[%s1051_s1 + $0x68] sm:$0xff]  }
   0x6   :  { %697 = vmatprep.subr.bf16.mxu1 %v782_v5  ;;  %v790_v13 = vld [vmem:[%s1051_s1 + $0xd8] sm:$0xff]   ;;  %v794_v17 = vld [vmem:[%s1051_s1 + $0xe0] sm:$0xff]   ;;  %v798_v21 = vld [vmem:[%s1051_s1 + $0xe8] sm:$0xff]  }
   0x7   :  { %v791_v14 = vld [vmem:[%s1051_s1 + $0x18] sm:$0xff]   ;;  %v795_v18 = vld [vmem:[%s1051_s1 + $0x20] sm:$0xff]   ;;  %v799_v22 = vld [vmem:[%s1051_s1 + $0x28] sm:$0xff]  }
   0x8   :  { %676 = vmatpush3.bf16.msra.mxu0 %v783_v6  ;;  %v792_v15 = vld [vmem:[%s1051_s1 + $0x98] sm:$0xff]   ;;  %v796_v19 = vld [vmem:[%s1051_s1 + $0xa0] sm:$0xff]   ;;  %v800_v23 = vld [vmem:[%s1051_s1 + $0xa8] sm:$0xff]  }
   0x9   :  { %698 = vmatpush3.bf16.msra.mxu1 %v784_v7  ;;  %677 = vmatprep.subr.bf16.mxu0 %v785_v8  ;;  %v801_v24 = vld [vmem:[%s1051_s1 + $0x70] sm:$0xff]   ;;  %v805_v28 = vld [vmem:[%s1051_s1 + $0x78] sm:$0xff]   ;;  %v27_v32 = vld [vmem:[%s1052_s0] sm:$0xff] }
   0xa   :  { %699 = vmatprep.subr.bf16.mxu1 %v786_v9  ;;  %v802_v25 = vld [vmem:[%s1051_s1 + $0xf0] sm:$0xff]   ;;  %v806_v29 = vld [vmem:[%s1051_s1 + $0xf8] sm:$0xff]   ;;  %v28_v33 = vld [vmem:[%s1052_s0 + $0x8] sm:$0xff]  ;;  %v619_v34 = vcombine.low %v27_v32, %v27_v32  ;;  %v620_v35 = vcombine.high %v27_v32, %v27_v32 }
   0xb   :  { %v803_v26 = vld [vmem:[%s1051_s1 + $0x30] sm:$0xff]   ;;  %v807_v30 = vld [vmem:[%s1051_s1 + $0x38] sm:$0xff]   ;;  %v621_v36 = vcombine.low %v28_v33, %v28_v33  ;;  %v622_v37 = vcombine.high %v28_v33, %v28_v33  ;;  %v813_v38 = vld [vmem:[%s1053_s3] sm:$0xff]  }
   0xc   :  { %678 = vmatpush3.bf16.msra.mxu0 %v787_v10  ;;  %v804_v27 = vld [vmem:[%s1051_s1 + $0xb0] sm:$0xff]   ;;  %v808_v31 = vld [vmem:[%s1051_s1 + $0xb8] sm:$0xff]   ;;  %338 = vmatprep.mubr.bf16.mxu0 %v620_v35  ;;  %v814_v40 = vld [vmem:[%s1053_s3 + $0x8] sm:$0xff]  }
   0xd   :  { %700 = vmatpush3.bf16.msra.mxu1 %v788_v11  ;;  %679 = vmatprep.subr.bf16.mxu0 %v789_v12  ;;  %v815_v41 = vld [vmem:[%s1053_s3 + $0x10] sm:$0xff]   ;;  %v816_v42 = vld [vmem:[%s1053_s3 + $0x18] sm:$0xff]   ;;  %v817_v43 = vld [vmem:[%s1053_s3 + $0x20] sm:$0xff]  }
   0xe   :  { %701 = vmatprep.subr.bf16.mxu1 %v790_v13  ;;  %378 = vmatprep.mubr.bf16.mxu1 %v622_v37  ;;  %v818_v44 = vld [vmem:[%s1053_s3 + $0x28] sm:$0xff]   ;;  %v819_v45 = vld [vmem:[%s1053_s3 + $0x30] sm:$0xff]   ;;  %v820_v46 = vld [vmem:[%s1053_s3 + $0x38] sm:$0xff]  }
   0xf   :  { %v821_v47 = vld [vmem:[%s1054_s5] sm:$0xff]   ;;  %v822_v48 = vld [vmem:[%s1054_s5 + $0x8] sm:$0xff]   ;;  %v823_v49 = vld [vmem:[%s1054_s5 + $0x10] sm:$0xff]  }
  0x10   :  { %680 = vmatpush3.bf16.msra.mxu0 %v791_v14  ;;  %v824_v50 = vld [vmem:[%s1054_s5 + $0x18] sm:$0xff]   ;;  %v825_v51 = vld [vmem:[%s1054_s5 + $0x20] sm:$0xff]   ;;  %v826_v52 = vld [vmem:[%s1054_s5 + $0x28] sm:$0xff]  }
  0x11   :  { %702 = vmatpush3.bf16.msra.mxu1 %v792_v15  ;;  %681 = vmatprep.subr.bf16.mxu0 %v793_v16  ;;  %v618_v55 = vld [vmem:[%s1055_s2] ss:$0 sm:$0xff]  ;;  %v827_v4 = vld [vmem:[%s1054_s5 + $0x30] sm:$0xff]   ;;  %v828_v5 = vld [vmem:[%s1054_s5 + $0x38] sm:$0xff]  }
  0x12   :  { %703 = vmatprep.subr.bf16.mxu1 %v794_v17  ;;  %v655_v6 = vld [vmem:[%s1056_s4] ss:$0 sm:$0xff] }
  0x13   :  { %v664_v14 = vld [vmem:[%s1057_s6] ss:$0 sm:$0xff] }
  0x14   :  { %682 = vmatpush3.bf16.msra.mxu0 %v795_v18 }
  0x15   :  { %704 = vmatpush3.bf16.msra.mxu1 %v796_v19  ;;  %683 = vmatprep.subr.bf16.mxu0 %v797_v20 }
  0x16   :  { %705 = vmatprep.subr.bf16.mxu1 %v798_v21 }
  0x18   :  { %684 = vmatpush3.bf16.msra.mxu0 %v799_v22 }
  0x19   :  { %706 = vmatpush3.bf16.msra.mxu1 %v800_v23  ;;  %685 = vmatprep.subr.bf16.mxu0 %v801_v24 }
  0x1a   :  { %707 = vmatprep.subr.bf16.mxu1 %v802_v25 }
  0x1c   :  { %686 = vmatpush3.bf16.msra.mxu0 %v803_v26 }
  0x1d   :  { %708 = vmatpush3.bf16.msra.mxu1 %v804_v27  ;;  %687 = vmatprep.subr.bf16.mxu0 %v805_v28 }
  0x1e   :  { %709 = vmatprep.subr.bf16.mxu1 %v806_v29 }
  0x20   :  { %688 = vmatpush3.bf16.msra.mxu0 %v807_v30 }
  0x21   :  { %710 = vmatpush3.bf16.msra.mxu1 %v808_v31  ;;  %735 = vmatprep.subr.bf16.mxu0 %v829_v39 }
  0x22   :  { %755 = vmatprep.subr.bf16.mxu1 %v829_v39 }
  0x23   :  { %339 = vmatmul.mubr.bf16.vlgmr.msra.gmra.mrb[0].mxu0 %v619_v34 }
  0x24   :  { %379 = vmatmul.mubr.bf16.vlgmr.msra.gmra.mrb[0].mxu1 %v621_v36  ;;  %736 = vmatpush3.bf16.msra.mxu0 %v813_v38 }
  0x25   :  { %737 = vmatprep.subr.bf16.mxu0 %v829_v39  ;;  %751 = vmatprep.mubr.msk.bf16.mxu0 %vm830_vm0, %v829_v39 }
  0x26   :  { %771 = vmatprep.mubr.msk.bf16.mxu1 %vm830_vm0, %v829_v39  ;;  %756 = vmatpush3.bf16.msra.mxu1 %v821_v47 }
  0x27   :  { %757 = vmatprep.subr.bf16.mxu1 %v829_v39 }
  0x28   :  { %738 = vmatpush3.bf16.msra.mxu0 %v814_v40 }
  0x29   :  { %739 = vmatprep.subr.bf16.mxu0 %v829_v39 }
  0x2a   :  { %758 = vmatpush3.bf16.msra.mxu1 %v822_v48 }
  0x2b   :  { %759 = vmatprep.subr.bf16.mxu1 %v829_v39 }
  0x2c   :  { %740 = vmatpush3.bf16.msra.mxu0 %v815_v41 }
  0x2d   :  { %741 = vmatprep.subr.bf16.mxu0 %v829_v39 }
  0x2e   :  { %760 = vmatpush3.bf16.msra.mxu1 %v823_v49 }
  0x2f   :  { %761 = vmatprep.subr.bf16.mxu1 %v829_v39 }
  0x30   :  { %742 = vmatpush3.bf16.msra.mxu0 %v816_v42 }
  0x31   :  { %743 = vmatprep.subr.bf16.mxu0 %v829_v39 }
  0x32   :  { %762 = vmatpush3.bf16.msra.mxu1 %v824_v50 }
  0x33   :  { %763 = vmatprep.subr.bf16.mxu1 %v829_v39 }
  0x34   :  { %744 = vmatpush3.bf16.msra.mxu0 %v817_v43 }
  0x35   :  { %745 = vmatprep.subr.bf16.mxu0 %v829_v39 }
  0x36   :  { %764 = vmatpush3.bf16.msra.mxu1 %v825_v51 }
  0x37   :  { %765 = vmatprep.subr.bf16.mxu1 %v829_v39 }
  0x38   :  { %746 = vmatpush3.bf16.msra.mxu0 %v818_v44 }
  0x39   :  { %747 = vmatprep.subr.bf16.mxu0 %v829_v39 }
  0x3a   :  { %766 = vmatpush3.bf16.msra.mxu1 %v826_v52 }
  0x3b   :  { %767 = vmatprep.subr.bf16.mxu1 %v829_v39 }
  0x3c   :  { %748 = vmatpush3.bf16.msra.mxu0 %v819_v45 }
  0x3d   :  { %749 = vmatprep.subr.bf16.mxu0 %v829_v39 }
  0x3e   :  { %768 = vmatpush3.bf16.msra.mxu1 %v827_v4 }
  0x3f   :  { %769 = vmatprep.subr.bf16.mxu1 %v829_v39 }
  0x40   :  { %750 = vmatpush3.bf16.msra.mxu0 %v820_v46 }
  0x42   :  { %770 = vmatpush3.bf16.msra.mxu1 %v828_v5 }
  0xf6   :  { %v689_v53 = vpop.f32.mrb[0].mxu0 }
  0xf7   :  { %v711_v54 = vpop.f32.mrb[0].mxu1  ;;  %v690_v56 = vpop.f32.mrb[1].mxu0 }
  0xf8   :  { %v712_v57 = vpop.f32.mrb[1].mxu1  ;;  %v691_v58 = vadd.f32 %v690_v56, %v689_v53  ;;  %v692_v60 = vpop.f32.mrb[2].mxu0 }
  0xf9   :  { %v713_v59 = vadd.f32 %v712_v57, %v711_v54  ;;  %v714_v61 = vpop.f32.mrb[2].mxu1  ;;  %v693_v62 = vpop.f32.mrb[3].mxu0 }
  0xfa   :  { %v715_v63 = vpop.f32.mrb[3].mxu1  ;;  %v341_v0 = vadd.f32 %v691_v58, %v618_v55 }
  0xfc   :  { %v381_v1 = vadd.f32 %v713_v59, %v341_v0 }
  0xfe   :  { %v386_v2 = vmax.f32 %v381_v1, 0.0 }
 0x100   :  { %v387_v3 = vpack.c.bf16 %v386_v2, %v386_v2 }
 0x102   :  { %752 = vmatmul.mubr.bf16.vlgmr.msra.gmra.mrb[4].mxu0 %v387_v3 }
 0x1d5   :  { %v493_v7 = vpop.f32.mrb[4].mxu0 }
 0x1d6   :  { %v494_v8 = vadd.f32 %v655_v6, %v493_v7  ;;  %v753_v9 = vpop.f32.mrb[5].mxu0 }
 0x1d7   :  { %v496_v10 = vpop.f32.mrb[6].mxu0 }
 0x1d8   :  { %v499_v11 = vmax.f32 %v494_v8, 0.0  ;;  %v754_v12 = vpop.f32.mrb[7].mxu0 }
 0x1da   :  { %v500_v13 = vpack.c.bf16 %v499_v11, %v499_v11 }
 0x1dc   :  { %772 = vmatmul.mubr.bf16.vlgmr.msra.gmra.mrb[4].mxu1 %v500_v13 }
 0x2af   :  { %v606_v15 = vpop.f32.mrb[4].mxu1 }
 0x2b0   :  { %v607_v16 = vadd.f32 %v664_v14, %v606_v15  ;;  %v773_v17 = vpop.f32.mrb[5].mxu1 }
 0x2b1   :  { %v609_v18 = vpop.f32.mrb[6].mxu1 }
 0x2b2   :  { %613 = vst.msk [vmem:[%s1058_s7] sm:$0xff] %vm612_vm1, %v607_v16  ;;  %v774_v19 = vpop.f32.mrb[7].mxu1 }

</bundles_post_ra>
